<compile_context>
chip_gen: v6e
topology: v6e:2x2x1
jax: 0.10.0
libtpu: 0.0.40
codegen_flags: <defaults>
</compile_context>

<pallas_src>
import functools

import jax
import jax.numpy as jnp
from jax.experimental import pallas as pl
from jax.experimental.pallas import tpu as pltpu


# ----------------------------- Pallas kernel ------------------------------ #

def _make_encoder_kernel(B, L, S, D, nhead, eps_eff, mxu_dtype):
    """CrossTransformerEncoder forward; all rows of all batches in one step."""
    Dh = D // nhead

    def feat(t):  # elu(t) + 1  ==  t + 1 (t > 0) else exp(t)
        return jnp.where(t > 0, t + 1.0, jnp.exp(t))

    def kernel(x_ref, s_ref, wq_ref, wkv_ref, wm_ref,
               g1_ref, b1_ref, w1x_ref, w1m_ref, w2_ref, g2_ref, b2_ref,
               o_ref):
        f32 = jnp.float32
        cast = lambda t: t.astype(mxu_dtype)

        x = x_ref[...].astype(f32)       # [B*L, D]
        src = s_ref[...].astype(f32)     # [B*S, D]

        # Row-fused projections: batch folded into the MXU M dimension.
        q = jnp.dot(cast(x), cast(wq_ref[...]), preferred_element_type=f32)
        kv = jnp.dot(cast(src), cast(wkv_ref[...]), preferred_element_type=f32)
        k, v = kv[:, :D], kv[:, D:]

        # Linear attention. B / nhead are small static ints -> unrolled at
        # trace time; only the tiny per-batch [Dh,S]x[S,Dh+1] dots stay batched.
        ones_col = jnp.ones((S, 1), f32)
        rows = []
        for b in range(B):
            xr = slice(b * L, (b + 1) * L)
            sr = slice(b * S, (b + 1) * S)
            heads = []
            for h in range(nhead):
                hs = slice(h * Dh, (h + 1) * Dh)
                Qf = feat(q[xr, hs])                                   # [L, Dh]
                Kf = feat(k[sr, hs])                                   # [S, Dh]
                Va = jnp.concatenate([v[sr, hs], ones_col], axis=-1)   # [S, Dh+1]
                # One matmul yields KV (cols :Dh) and Ksum (last column).
                W = jnp.dot(Kf.T, Va, preferred_element_type=f32)      # [Dh, Dh+1]
                oa = jnp.dot(Qf, W, preferred_element_type=f32)        # [L, Dh+1]
                # Exact reciprocal kept for the tight reference check;
                # pl.reciprocal(..., approx=True) would offload to the EUP.
                heads.append(oa[:, :Dh] / (oa[:, Dh:] + eps_eff))
            rows.append(heads[0] if nhead == 1
                        else jnp.concatenate(heads, axis=-1))
        msg = rows[0] if B == 1 else jnp.concatenate(rows, axis=0)     # [B*L, D]

        # merge projection
        msg = jnp.dot(cast(msg), cast(wm_ref[...]), preferred_element_type=f32)

        def layer_norm(t, g, bt):
            mu = jnp.mean(t, axis=-1, keepdims=True)
            var = jnp.mean((t - mu) ** 2, axis=-1, keepdims=True)
            return (t - mu) * jax.lax.rsqrt(var + 1e-5) * g + bt

        msg = layer_norm(msg, g1_ref[...], b1_ref[...])

        # MLP: relu(x @ W1x + msg @ W1m) @ W2   (dropout = identity)
        h1 = (jnp.dot(cast(x), cast(w1x_ref[...]), preferred_element_type=f32) +
              jnp.dot(cast(msg), cast(w1m_ref[...]), preferred_element_type=f32))
        h1 = jnp.maximum(h1, 0.0)
        msg = jnp.dot(cast(h1), cast(w2_ref[...]), preferred_element_type=f32)

        msg = layer_norm(msg, g2_ref[...], b2_ref[...])

        o_ref[...] = (x + msg).astype(o_ref.dtype)

    return kernel


def cross_encoder_layer(x, source, params, nhead, rep=1,
                        mxu_dtype=jnp.float32):
    """One CrossTransformerEncoder layer on de-duplicated rows.

    x:      [B, L, D]  queries / residual stream.
    source: [B, S, D]  distinct source rows; the logical source is each row
                       replicated `rep` times (v_length = S*rep).  The
                       replication folds into the linear-attention algebra
                       exactly (eps -> eps/rep), so no materialization.
    """
    B, L, D = x.shape
    S = source.shape[1]
    eps_eff = 1e-6 / float(rep)
    kernel = _make_encoder_kernel(B, L, S, D, nhead, eps_eff, mxu_dtype)

    x2 = x.reshape(B * L, D)
    s2 = source.reshape(B * S, D)
    wkv = jnp.concatenate([params["wk"], params["wv"]], axis=1)   # [D, 2D]
    w1x, w1m = params["w1"][:D], params["w1"][D:]                 # split halves

    def full(shape):
        return pl.BlockSpec(shape, lambda i: (0,) * len(shape))

    out = pl.pallas_call(
        kernel,
        out_shape=jax.ShapeDtypeStruct((B * L, D), x.dtype),
        grid_spec=pltpu.PrefetchScalarGridSpec(
            num_scalar_prefetch=0,
            grid=(1,),                        # single fused step, all in VMEM
            in_specs=[
                full((B * L, D)),             # x rows
                full((B * S, D)),             # source rows
                full((D, D)),                 # Wq
                full((D, 2 * D)),             # Wk|Wv fused
                full((D, D)),                 # Wmerge
                full((1, D)), full((1, D)),   # norm1 gamma / beta
                full((D, 2 * D)),             # W1 (x half)
                full((D, 2 * D)),             # W1 (msg half)
                full((2 * D, D)),             # W2
                full((1, D)), full((1, D)),   # norm2 gamma / beta
            ],
            out_specs=full((B * L, D)),
        ),
        compiler_params=pltpu.CompilerParams(
            dimension_semantics=("arbitrary",)),
    )(x2, s2, params["wq"], wkv, params["wm"],
      params["g1"], params["b1"], w1x, w1m, params["w2"],
      params["g2"], params["b2"])
    return out.reshape(B, L, D)


# -------------------------- CrossTransformer glue -------------------------- #

def cross_transformer(qfea, kfea, params, nhead=1, layer_nums=1,
                      mxu_dtype=jnp.float32):
    """qfea: [B, N, D], kfea: [B, D]  ->  [B, N, N, D]."""
    B, N, D = qfea.shape

    # Stage 1 (VCR): source = kfea broadcast to N rows (tiny, rep kept at 1).
    kfea_rep = jnp.broadcast_to(kfea[:, None, :], (B, N, D))
    for _ in range(layer_nums):
        qfea = cross_encoder_layer(qfea, kfea_rep, params, nhead, rep=1,
                                   mxu_dtype=mxu_dtype)

    # Stage 2 (VVR): torch builds
    #   qfea_end  [B, N*N, D], row i*N+j = qfea[:, i]   (source)
    #   qfea_start[B, N*N, D], row i*N+j = qfea[:, j]   (x)
    # The attention is global over the source, so it only sees the N distinct
    # rows (each replicated N times) and every query/output row depends only
    # on j -> run the whole stage on [B, N, D] and broadcast along i.
    src = qfea
    out = qfea
    for _ in range(layer_nums):
        out = cross_encoder_layer(out, src, params, nhead, rep=N,
                                  mxu_dtype=mxu_dtype)
    return jnp.broadcast_to(out[:, None, :, :], (B, N, N, D))


# ------------------------- pure-JAX reference check ------------------------ #
# Faithful (materialized N^2) re-implementation of the torch forward.

def _ref_encoder(x, src, p, nhead):
    B, L, D = x.shape
    S = src.shape[1]
    hd = D // nhead
    q = (x @ p["wq"]).reshape(B, L, nhead, hd)
    k = (src @ p["wk"]).reshape(B, S, nhead, hd)
    v = (src @ p["wv"]).reshape(B, S, nhead, hd)
    Q = jax.nn.elu(q) + 1.0
    K = jax.nn.elu(k) + 1.0
    v = v / S
    KV = jnp.einsum("nshd,nshv->nhdv", K, v)
    Z = 1.0 / (jnp.einsum("nlhd,nhd->nlh", Q, K.sum(axis=1)) + 1e-6)
    msg = jnp.einsum("nlhd,nhdv,nlh->nlhv", Q, KV, Z) * S
    msg = msg.reshape(B, L, D) @ p["wm"]

    def ln(t, g, b):
        mu = t.mean(-1, keepdims=True)
        var = ((t - mu) ** 2).mean(-1, keepdims=True)
        return (t - mu) / jnp.sqrt(var + 1e-5) * g + b

    msg = ln(msg, p["g1"], p["b1"])
    cat = jnp.concatenate([x, msg], axis=-1)
    msg = jnp.maximum(cat @ p["w1"], 0.0) @ p["w2"]
    msg = ln(msg, p["g2"], p["b2"])
    return x + msg


def cross_transformer_ref(qfea, kfea, params, nhead=1, layer_nums=1):
    B, N, D = qfea.shape
    kfea_rep = jnp.broadcast_to(kfea[:, None, :], (B, N, D))
    for _ in range(layer_nums):
        qfea = _ref_encoder(qfea, kfea_rep, params, nhead)
    qfea_end = jnp.repeat(qfea, N, axis=1)       # row i*N+j = qfea[:, i]
    qfea_start = jnp.tile(qfea, (1, N, 1))       # row i*N+j = qfea[:, j]
    for _ in range(layer_nums):
        qfea_start = _ref_encoder(qfea_start, qfea_end, params, nhead)
    return qfea_start.reshape(B, N, N, D)


# ---------------------------------- main ----------------------------------- #

if __name__ == "__main__":
    key = jax.random.PRNGKey(0)
    B, N, D = 2, 8, 32
    nhead = 1
    layer_nums = 1

    kx, kk, *wkeys = jax.random.split(key, 8)
    qfea = jax.random.normal(kx, (B, N, D), jnp.float32)
    kfea = jax.random.normal(kk, (B, D), jnp.float32)

    def xavier(k, shape):
        bound = (6.0 / (shape[0] + shape[1])) ** 0.5
        return jax.random.uniform(k, shape, jnp.float32, -bound, bound)

    # Linear weights stored as [in, out] (transpose of torch's [out, in]).
    params = {
        "wq": xavier(wkeys[0], (D, D)),
        "wk": xavier(wkeys[1], (D, D)),
        "wv": xavier(wkeys[2], (D, D)),
        "wm": xavier(wkeys[3], (D, D)),
        "w1": xavier(wkeys[4], (2 * D, 2 * D)),
        "w2": xavier(wkeys[5], (2 * D, D)),
        "g1": jnp.ones((1, D), jnp.float32),
        "b1": jnp.zeros((1, D), jnp.float32),
        "g2": jnp.ones((1, D), jnp.float32),
        "b2": jnp.zeros((1, D), jnp.float32),
    }

    run = jax.jit(functools.partial(cross_transformer, nhead=nhead,
                                    layer_nums=layer_nums))
    out = jax.block_until_ready(run(qfea, kfea, params))

    with jax.default_matmul_precision("float32"):
        ref = cross_transformer_ref(qfea, kfea, params, nhead=nhead,
                                    layer_nums=layer_nums)
        ref = jax.block_until_ready(ref)

    assert out.shape == (B, N, N, D), out.shape
    assert jnp.allclose(out, ref, atol=1e-4, rtol=1e-3), (
        "mismatch vs JAX reference, max abs err = "
        f"{float(jnp.max(jnp.abs(out - ref)))}")

    print("KERNEL_OK")
</pallas_src>

<mosaic_0001>
module attributes {stable_mosaic.version = 11 : i64} {
  func.func @kernel(%arg0: i32, %arg1: memref<16x32xf32, #tpu.memory_space<vmem>>, %arg2: memref<16x32xf32, #tpu.memory_space<vmem>>, %arg3: memref<32x32xf32, #tpu.memory_space<vmem>>, %arg4: memref<32x64xf32, #tpu.memory_space<vmem>>, %arg5: memref<32x32xf32, #tpu.memory_space<vmem>>, %arg6: memref<1x32xf32, #tpu.memory_space<vmem>>, %arg7: memref<1x32xf32, #tpu.memory_space<vmem>>, %arg8: memref<32x64xf32, #tpu.memory_space<vmem>>, %arg9: memref<32x64xf32, #tpu.memory_space<vmem>>, %arg10: memref<64x32xf32, #tpu.memory_space<vmem>>, %arg11: memref<1x32xf32, #tpu.memory_space<vmem>>, %arg12: memref<1x32xf32, #tpu.memory_space<vmem>>, %arg13: memref<16x32xf32, #tpu.memory_space<vmem>>) attributes {dimension_semantics = [#tpu.dimension_semantics<arbitrary>], iteration_bounds = array<i64: 1>, scalar_prefetch = 0 : i64, scratch_operands = 0 : i64, tpu.core_type = #tpu.core_type<tc>, window_params = [{pipeline_mode = #tpu.pipeline_mode<synchronous>, transform_indices = @transform_0, window_bounds = array<i64: 16, 32>}, {pipeline_mode = #tpu.pipeline_mode<synchronous>, transform_indices = @transform_1, window_bounds = array<i64: 16, 32>}, {pipeline_mode = #tpu.pipeline_mode<synchronous>, transform_indices = @transform_2, window_bounds = array<i64: 32, 32>}, {pipeline_mode = #tpu.pipeline_mode<synchronous>, transform_indices = @transform_3, window_bounds = array<i64: 32, 64>}, {pipeline_mode = #tpu.pipeline_mode<synchronous>, transform_indices = @transform_4, window_bounds = array<i64: 32, 32>}, {pipeline_mode = #tpu.pipeline_mode<synchronous>, transform_indices = @transform_5, window_bounds = array<i64: 1, 32>}, {pipeline_mode = #tpu.pipeline_mode<synchronous>, transform_indices = @transform_6, window_bounds = array<i64: 1, 32>}, {pipeline_mode = #tpu.pipeline_mode<synchronous>, transform_indices = @transform_7, window_bounds = array<i64: 32, 64>}, {pipeline_mode = #tpu.pipeline_mode<synchronous>, transform_indices = @transform_8, window_bounds = array<i64: 32, 64>}, {pipeline_mode = #tpu.pipeline_mode<synchronous>, transform_indices = @transform_9, window_bounds = array<i64: 64, 32>}, {pipeline_mode = #tpu.pipeline_mode<synchronous>, transform_indices = @transform_10, window_bounds = array<i64: 1, 32>}, {pipeline_mode = #tpu.pipeline_mode<synchronous>, transform_indices = @transform_11, window_bounds = array<i64: 1, 32>}, {pipeline_mode = #tpu.pipeline_mode<synchronous>, transform_indices = @transform_12, window_bounds = array<i64: 16, 32>}]} {
    %c0 = arith.constant 0 : index
    %c0_0 = arith.constant 0 : index
    %0 = vector.load %arg1[%c0, %c0_0] : memref<16x32xf32, #tpu.memory_space<vmem>>, vector<16x32xf32>
    %c0_1 = arith.constant 0 : index
    %c0_2 = arith.constant 0 : index
    %1 = vector.load %arg2[%c0_1, %c0_2] : memref<16x32xf32, #tpu.memory_space<vmem>>, vector<16x32xf32>
    %c0_3 = arith.constant 0 : index
    %c0_4 = arith.constant 0 : index
    %2 = vector.load %arg3[%c0_3, %c0_4] : memref<32x32xf32, #tpu.memory_space<vmem>>, vector<32x32xf32>
    %cst = arith.constant dense<0.000000e+00> : vector<16x32xf32>
    %3 = tpu.matmul %0, %2, %cst {dimension_numbers = #tpu.dot_dimension_numbers<[1], [0], [0], [1], [0, 0, 1, 1], [], []>} : vector<16x32xf32>, vector<32x32xf32>, vector<16x32xf32> -> vector<16x32xf32>
    %c0_5 = arith.constant 0 : index
    %c0_6 = arith.constant 0 : index
    %4 = vector.load %arg4[%c0_5, %c0_6] : memref<32x64xf32, #tpu.memory_space<vmem>>, vector<32x64xf32>
    %cst_7 = arith.constant dense<0.000000e+00> : vector<16x64xf32>
    %5 = tpu.matmul %1, %4, %cst_7 {dimension_numbers = #tpu.dot_dimension_numbers<[1], [0], [0], [1], [0, 0, 1, 1], [], []>} : vector<16x32xf32>, vector<32x64xf32>, vector<16x64xf32> -> vector<16x64xf32>
    %6 = vector.extract_strided_slice %5 {offsets = [0, 0], sizes = [16, 32], strides = [1, 1]} : vector<16x64xf32> to vector<16x32xf32>
    %7 = vector.extract_strided_slice %5 {offsets = [0, 32], sizes = [16, 32], strides = [1, 1]} : vector<16x64xf32> to vector<16x32xf32>
    %cst_8 = arith.constant 1.000000e+00 : f32
    %8 = vector.broadcast %cst_8 : f32 to vector<8x1xf32>
    %9 = vector.extract_strided_slice %3 {offsets = [0, 0], sizes = [8, 32], strides = [1, 1]} : vector<16x32xf32> to vector<8x32xf32>
    %cst_9 = arith.constant 0.000000e+00 : f32
    %10 = vector.broadcast %cst_9 : f32 to vector<8x32xf32>
    %11 = arith.cmpf ogt, %9, %10 : vector<8x32xf32>
    %cst_10 = arith.constant 1.000000e+00 : f32
    %12 = vector.broadcast %cst_10 : f32 to vector<8x32xf32>
    %13 = arith.addf %9, %12 : vector<8x32xf32>
    %14 = math.exp %9 : vector<8x32xf32>
    %15 = arith.select %11, %13, %14 : vector<8x32xi1>, vector<8x32xf32>
    %16 = vector.extract_strided_slice %6 {offsets = [0, 0], sizes = [8, 32], strides = [1, 1]} : vector<16x32xf32> to vector<8x32xf32>
    %cst_11 = arith.constant 0.000000e+00 : f32
    %17 = vector.broadcast %cst_11 : f32 to vector<8x32xf32>
    %18 = arith.cmpf ogt, %16, %17 : vector<8x32xf32>
    %cst_12 = arith.constant 1.000000e+00 : f32
    %19 = vector.broadcast %cst_12 : f32 to vector<8x32xf32>
    %20 = arith.addf %16, %19 : vector<8x32xf32>
    %21 = math.exp %16 : vector<8x32xf32>
    %22 = arith.select %18, %20, %21 : vector<8x32xi1>, vector<8x32xf32>
    %23 = vector.extract_strided_slice %7 {offsets = [0, 0], sizes = [8, 32], strides = [1, 1]} : vector<16x32xf32> to vector<8x32xf32>
    %24 = tpu.concatenate %23, %8 in 1 : vector<8x32xf32>, vector<8x1xf32> -> vector<8x33xf32>
    %25 = tpu.transpose %22, [1, 0] : vector<8x32xf32> -> vector<32x8xf32>
    %cst_13 = arith.constant dense<0.000000e+00> : vector<32x33xf32>
    %26 = tpu.matmul %25, %24, %cst_13 {dimension_numbers = #tpu.dot_dimension_numbers<[1], [0], [0], [1], [0, 0, 1, 1], [], []>} : vector<32x8xf32>, vector<8x33xf32>, vector<32x33xf32> -> vector<32x33xf32>
    %cst_14 = arith.constant dense<0.000000e+00> : vector<8x33xf32>
    %27 = tpu.matmul %15, %26, %cst_14 {dimension_numbers = #tpu.dot_dimension_numbers<[1], [0], [0], [1], [0, 0, 1, 1], [], []>} : vector<8x32xf32>, vector<32x33xf32>, vector<8x33xf32> -> vector<8x33xf32>
    %28 = vector.extract_strided_slice %27 {offsets = [0, 0], sizes = [8, 32], strides = [1, 1]} : vector<8x33xf32> to vector<8x32xf32>
    %29 = vector.extract_strided_slice %27 {offsets = [0, 32], sizes = [8, 1], strides = [1, 1]} : vector<8x33xf32> to vector<8x1xf32>
    %cst_15 = arith.constant 9.99999997E-7 : f32
    %30 = vector.broadcast %cst_15 : f32 to vector<8x1xf32>
    %31 = arith.addf %29, %30 : vector<8x1xf32>
    %32 = vector.broadcast %31 : vector<8x1xf32> to vector<8x32xf32>
    %33 = arith.divf %28, %32 : vector<8x32xf32>
    %34 = vector.extract_strided_slice %3 {offsets = [8, 0], sizes = [8, 32], strides = [1, 1]} : vector<16x32xf32> to vector<8x32xf32>
    %cst_16 = arith.constant 0.000000e+00 : f32
    %35 = vector.broadcast %cst_16 : f32 to vector<8x32xf32>
    %36 = arith.cmpf ogt, %34, %35 : vector<8x32xf32>
    %cst_17 = arith.constant 1.000000e+00 : f32
    %37 = vector.broadcast %cst_17 : f32 to vector<8x32xf32>
    %38 = arith.addf %34, %37 : vector<8x32xf32>
    %39 = math.exp %34 : vector<8x32xf32>
    %40 = arith.select %36, %38, %39 : vector<8x32xi1>, vector<8x32xf32>
    %41 = vector.extract_strided_slice %6 {offsets = [8, 0], sizes = [8, 32], strides = [1, 1]} : vector<16x32xf32> to vector<8x32xf32>
    %cst_18 = arith.constant 0.000000e+00 : f32
    %42 = vector.broadcast %cst_18 : f32 to vector<8x32xf32>
    %43 = arith.cmpf ogt, %41, %42 : vector<8x32xf32>
    %cst_19 = arith.constant 1.000000e+00 : f32
    %44 = vector.broadcast %cst_19 : f32 to vector<8x32xf32>
    %45 = arith.addf %41, %44 : vector<8x32xf32>
    %46 = math.exp %41 : vector<8x32xf32>
    %47 = arith.select %43, %45, %46 : vector<8x32xi1>, vector<8x32xf32>
    %48 = vector.extract_strided_slice %7 {offsets = [8, 0], sizes = [8, 32], strides = [1, 1]} : vector<16x32xf32> to vector<8x32xf32>
    %49 = tpu.concatenate %48, %8 in 1 : vector<8x32xf32>, vector<8x1xf32> -> vector<8x33xf32>
    %50 = tpu.transpose %47, [1, 0] : vector<8x32xf32> -> vector<32x8xf32>
    %cst_20 = arith.constant dense<0.000000e+00> : vector<32x33xf32>
    %51 = tpu.matmul %50, %49, %cst_20 {dimension_numbers = #tpu.dot_dimension_numbers<[1], [0], [0], [1], [0, 0, 1, 1], [], []>} : vector<32x8xf32>, vector<8x33xf32>, vector<32x33xf32> -> vector<32x33xf32>
    %cst_21 = arith.constant dense<0.000000e+00> : vector<8x33xf32>
    %52 = tpu.matmul %40, %51, %cst_21 {dimension_numbers = #tpu.dot_dimension_numbers<[1], [0], [0], [1], [0, 0, 1, 1], [], []>} : vector<8x32xf32>, vector<32x33xf32>, vector<8x33xf32> -> vector<8x33xf32>
    %53 = vector.extract_strided_slice %52 {offsets = [0, 0], sizes = [8, 32], strides = [1, 1]} : vector<8x33xf32> to vector<8x32xf32>
    %54 = vector.extract_strided_slice %52 {offsets = [0, 32], sizes = [8, 1], strides = [1, 1]} : vector<8x33xf32> to vector<8x1xf32>
    %cst_22 = arith.constant 9.99999997E-7 : f32
    %55 = vector.broadcast %cst_22 : f32 to vector<8x1xf32>
    %56 = arith.addf %54, %55 : vector<8x1xf32>
    %57 = vector.broadcast %56 : vector<8x1xf32> to vector<8x32xf32>
    %58 = arith.divf %53, %57 : vector<8x32xf32>
    %59 = tpu.concatenate %33, %58 in 0 : vector<8x32xf32>, vector<8x32xf32> -> vector<16x32xf32>
    %c0_23 = arith.constant 0 : index
    %c0_24 = arith.constant 0 : index
    %60 = vector.load %arg5[%c0_23, %c0_24] : memref<32x32xf32, #tpu.memory_space<vmem>>, vector<32x32xf32>
    %cst_25 = arith.constant dense<0.000000e+00> : vector<16x32xf32>
    %61 = tpu.matmul %59, %60, %cst_25 {dimension_numbers = #tpu.dot_dimension_numbers<[1], [0], [0], [1], [0, 0, 1, 1], [], []>} : vector<16x32xf32>, vector<32x32xf32>, vector<16x32xf32> -> vector<16x32xf32>
    %c0_26 = arith.constant 0 : index
    %c0_27 = arith.constant 0 : index
    %62 = vector.load %arg6[%c0_26, %c0_27] : memref<1x32xf32, #tpu.memory_space<vmem>>, vector<1x32xf32>
    %c0_28 = arith.constant 0 : index
    %c0_29 = arith.constant 0 : index
    %63 = vector.load %arg7[%c0_28, %c0_29] : memref<1x32xf32, #tpu.memory_space<vmem>>, vector<1x32xf32>
    %cst_30 = arith.constant dense<0.000000e+00> : vector<16xf32>
    %64 = vector.multi_reduction <add>, %61, %cst_30 [1] : vector<16x32xf32> to vector<16xf32>
    %65 = vector.shape_cast %64 : vector<16xf32> to vector<16x1xf32>
    %cst_31 = arith.constant 3.200000e+01 : f32
    %66 = vector.broadcast %cst_31 : f32 to vector<16x1xf32>
    %67 = arith.divf %65, %66 : vector<16x1xf32>
    %68 = vector.broadcast %67 : vector<16x1xf32> to vector<16x32xf32>
    %69 = arith.subf %61, %68 : vector<16x32xf32>
    %70 = arith.mulf %69, %69 : vector<16x32xf32>
    %cst_32 = arith.constant dense<0.000000e+00> : vector<16xf32>
    %71 = vector.multi_reduction <add>, %70, %cst_32 [1] : vector<16x32xf32> to vector<16xf32>
    %72 = vector.shape_cast %71 : vector<16xf32> to vector<16x1xf32>
    %cst_33 = arith.constant 3.200000e+01 : f32
    %73 = vector.broadcast %cst_33 : f32 to vector<16x1xf32>
    %74 = arith.divf %72, %73 : vector<16x1xf32>
    %75 = vector.broadcast %67 : vector<16x1xf32> to vector<16x32xf32>
    %76 = arith.subf %61, %75 : vector<16x32xf32>
    %cst_34 = arith.constant 9.99999974E-6 : f32
    %77 = vector.broadcast %cst_34 : f32 to vector<16x1xf32>
    %78 = arith.addf %74, %77 : vector<16x1xf32>
    %79 = math.rsqrt %78 : vector<16x1xf32>
    %80 = vector.broadcast %79 : vector<16x1xf32> to vector<16x32xf32>
    %81 = arith.mulf %76, %80 : vector<16x32xf32>
    %82 = vector.broadcast %62 : vector<1x32xf32> to vector<16x32xf32>
    %83 = arith.mulf %81, %82 : vector<16x32xf32>
    %84 = vector.broadcast %63 : vector<1x32xf32> to vector<16x32xf32>
    %85 = arith.addf %83, %84 : vector<16x32xf32>
    %c0_35 = arith.constant 0 : index
    %c0_36 = arith.constant 0 : index
    %86 = vector.load %arg8[%c0_35, %c0_36] : memref<32x64xf32, #tpu.memory_space<vmem>>, vector<32x64xf32>
    %cst_37 = arith.constant dense<0.000000e+00> : vector<16x64xf32>
    %87 = tpu.matmul %0, %86, %cst_37 {dimension_numbers = #tpu.dot_dimension_numbers<[1], [0], [0], [1], [0, 0, 1, 1], [], []>} : vector<16x32xf32>, vector<32x64xf32>, vector<16x64xf32> -> vector<16x64xf32>
    %c0_38 = arith.constant 0 : index
    %c0_39 = arith.constant 0 : index
    %88 = vector.load %arg9[%c0_38, %c0_39] : memref<32x64xf32, #tpu.memory_space<vmem>>, vector<32x64xf32>
    %cst_40 = arith.constant dense<0.000000e+00> : vector<16x64xf32>
    %89 = tpu.matmul %85, %88, %cst_40 {dimension_numbers = #tpu.dot_dimension_numbers<[1], [0], [0], [1], [0, 0, 1, 1], [], []>} : vector<16x32xf32>, vector<32x64xf32>, vector<16x64xf32> -> vector<16x64xf32>
    %90 = arith.addf %87, %89 : vector<16x64xf32>
    %cst_41 = arith.constant 0.000000e+00 : f32
    %91 = vector.broadcast %cst_41 : f32 to vector<16x64xf32>
    %92 = arith.maximumf %90, %91 : vector<16x64xf32>
    %c0_42 = arith.constant 0 : index
    %c0_43 = arith.constant 0 : index
    %93 = vector.load %arg10[%c0_42, %c0_43] : memref<64x32xf32, #tpu.memory_space<vmem>>, vector<64x32xf32>
    %cst_44 = arith.constant dense<0.000000e+00> : vector<16x32xf32>
    %94 = tpu.matmul %92, %93, %cst_44 {dimension_numbers = #tpu.dot_dimension_numbers<[1], [0], [0], [1], [0, 0, 1, 1], [], []>} : vector<16x64xf32>, vector<64x32xf32>, vector<16x32xf32> -> vector<16x32xf32>
    %c0_45 = arith.constant 0 : index
    %c0_46 = arith.constant 0 : index
    %95 = vector.load %arg11[%c0_45, %c0_46] : memref<1x32xf32, #tpu.memory_space<vmem>>, vector<1x32xf32>
    %c0_47 = arith.constant 0 : index
    %c0_48 = arith.constant 0 : index
    %96 = vector.load %arg12[%c0_47, %c0_48] : memref<1x32xf32, #tpu.memory_space<vmem>>, vector<1x32xf32>
    %cst_49 = arith.constant dense<0.000000e+00> : vector<16xf32>
    %97 = vector.multi_reduction <add>, %94, %cst_49 [1] : vector<16x32xf32> to vector<16xf32>
    %98 = vector.shape_cast %97 : vector<16xf32> to vector<16x1xf32>
    %cst_50 = arith.constant 3.200000e+01 : f32
    %99 = vector.broadcast %cst_50 : f32 to vector<16x1xf32>
    %100 = arith.divf %98, %99 : vector<16x1xf32>
    %101 = vector.broadcast %100 : vector<16x1xf32> to vector<16x32xf32>
    %102 = arith.subf %94, %101 : vector<16x32xf32>
    %103 = arith.mulf %102, %102 : vector<16x32xf32>
    %cst_51 = arith.constant dense<0.000000e+00> : vector<16xf32>
    %104 = vector.multi_reduction <add>, %103, %cst_51 [1] : vector<16x32xf32> to vector<16xf32>
    %105 = vector.shape_cast %104 : vector<16xf32> to vector<16x1xf32>
    %cst_52 = arith.constant 3.200000e+01 : f32
    %106 = vector.broadcast %cst_52 : f32 to vector<16x1xf32>
    %107 = arith.divf %105, %106 : vector<16x1xf32>
    %108 = vector.broadcast %100 : vector<16x1xf32> to vector<16x32xf32>
    %109 = arith.subf %94, %108 : vector<16x32xf32>
    %cst_53 = arith.constant 9.99999974E-6 : f32
    %110 = vector.broadcast %cst_53 : f32 to vector<16x1xf32>
    %111 = arith.addf %107, %110 : vector<16x1xf32>
    %112 = math.rsqrt %111 : vector<16x1xf32>
    %113 = vector.broadcast %112 : vector<16x1xf32> to vector<16x32xf32>
    %114 = arith.mulf %109, %113 : vector<16x32xf32>
    %115 = vector.broadcast %95 : vector<1x32xf32> to vector<16x32xf32>
    %116 = arith.mulf %114, %115 : vector<16x32xf32>
    %117 = vector.broadcast %96 : vector<1x32xf32> to vector<16x32xf32>
    %118 = arith.addf %116, %117 : vector<16x32xf32>
    %119 = arith.addf %0, %118 : vector<16x32xf32>
    %c0_54 = arith.constant 0 : index
    %c0_55 = arith.constant 0 : index
    %120 = vector.load %arg13[%c0_54, %c0_55] : memref<16x32xf32, #tpu.memory_space<vmem>>, vector<16x32xf32>
    tpu.vector_store %arg13[%c0_54, %c0_55], %119 {strides = array<i32>} : memref<16x32xf32, #tpu.memory_space<vmem>>, vector<16x32xf32>,
    return
  }
  func.func @transform_0(%arg0: i32) -> (i32, i32) {
    %c0_i32 = arith.constant 0 : i32
    %c0_i32_0 = arith.constant 0 : i32
    %c0_i32_1 = arith.constant 0 : i32
    return %c0_i32, %c0_i32_0 : i32, i32
  }
  func.func @transform_1(%arg0: i32) -> (i32, i32) {
    %c0_i32 = arith.constant 0 : i32
    %c0_i32_0 = arith.constant 0 : i32
    %c0_i32_1 = arith.constant 0 : i32
    return %c0_i32, %c0_i32_0 : i32, i32
  }
  func.func @transform_2(%arg0: i32) -> (i32, i32) {
    %c0_i32 = arith.constant 0 : i32
    %c0_i32_0 = arith.constant 0 : i32
    %c0_i32_1 = arith.constant 0 : i32
    return %c0_i32, %c0_i32_0 : i32, i32
  }
  func.func @transform_3(%arg0: i32) -> (i32, i32) {
    %c0_i32 = arith.constant 0 : i32
    %c0_i32_0 = arith.constant 0 : i32
    %c0_i32_1 = arith.constant 0 : i32
    return %c0_i32, %c0_i32_0 : i32, i32
  }
  func.func @transform_4(%arg0: i32) -> (i32, i32) {
    %c0_i32 = arith.constant 0 : i32
    %c0_i32_0 = arith.constant 0 : i32
    %c0_i32_1 = arith.constant 0 : i32
    return %c0_i32, %c0_i32_0 : i32, i32
  }
  func.func @transform_5(%arg0: i32) -> (i32, i32) {
    %c0_i32 = arith.constant 0 : i32
    %c0_i32_0 = arith.constant 0 : i32
    %c0_i32_1 = arith.constant 0 : i32
    return %c0_i32, %c0_i32_0 : i32, i32
  }
  func.func @transform_6(%arg0: i32) -> (i32, i32) {
    %c0_i32 = arith.constant 0 : i32
    %c0_i32_0 = arith.constant 0 : i32
    %c0_i32_1 = arith.constant 0 : i32
    return %c0_i32, %c0_i32_0 : i32, i32
  }
  func.func @transform_7(%arg0: i32) -> (i32, i32) {
    %c0_i32 = arith.constant 0 : i32
    %c0_i32_0 = arith.constant 0 : i32
    %c0_i32_1 = arith.constant 0 : i32
    return %c0_i32, %c0_i32_0 : i32, i32
  }
  func.func @transform_8(%arg0: i32) -> (i32, i32) {
    %c0_i32 = arith.constant 0 : i32
    %c0_i32_0 = arith.constant 0 : i32
    %c0_i32_1 = arith.constant 0 : i32
    return %c0_i32, %c0_i32_0 : i32, i32
  }
  func.func @transform_9(%arg0: i32) -> (i32, i32) {
    %c0_i32 = arith.constant 0 : i32
    %c0_i32_0 = arith.constant 0 : i32
    %c0_i32_1 = arith.constant 0 : i32
    return %c0_i32, %c0_i32_0 : i32, i32
  }
  func.func @transform_10(%arg0: i32) -> (i32, i32) {
    %c0_i32 = arith.constant 0 : i32
    %c0_i32_0 = arith.constant 0 : i32
    %c0_i32_1 = arith.constant 0 : i32
    return %c0_i32, %c0_i32_0 : i32, i32
  }
  func.func @transform_11(%arg0: i32) -> (i32, i32) {
    %c0_i32 = arith.constant 0 : i32
    %c0_i32_0 = arith.constant 0 : i32
    %c0_i32_1 = arith.constant 0 : i32
    return %c0_i32, %c0_i32_0 : i32, i32
  }
  func.func @transform_12(%arg0: i32) -> (i32, i32) {
    %c0_i32 = arith.constant 0 : i32
    %c0_i32_0 = arith.constant 0 : i32
    %c0_i32_1 = arith.constant 0 : i32
    return %c0_i32, %c0_i32_0 : i32, i32
  }
}

module attributes {stable_mosaic.version = 11 : i64} {
  func.func @kernel(%arg0: i32, %arg1: memref<16x32xf32, #tpu.memory_space<vmem>>, %arg2: memref<16x32xf32, #tpu.memory_space<vmem>>, %arg3: memref<32x32xf32, #tpu.memory_space<vmem>>, %arg4: memref<32x64xf32, #tpu.memory_space<vmem>>, %arg5: memref<32x32xf32, #tpu.memory_space<vmem>>, %arg6: memref<1x32xf32, #tpu.memory_space<vmem>>, %arg7: memref<1x32xf32, #tpu.memory_space<vmem>>, %arg8: memref<32x64xf32, #tpu.memory_space<vmem>>, %arg9: memref<32x64xf32, #tpu.memory_space<vmem>>, %arg10: memref<64x32xf32, #tpu.memory_space<vmem>>, %arg11: memref<1x32xf32, #tpu.memory_space<vmem>>, %arg12: memref<1x32xf32, #tpu.memory_space<vmem>>, %arg13: memref<16x32xf32, #tpu.memory_space<vmem>>) attributes {dimension_semantics = [#tpu.dimension_semantics<arbitrary>], iteration_bounds = array<i64: 1>, scalar_prefetch = 0 : i64, scratch_operands = 0 : i64, tpu.core_type = #tpu.core_type<tc>, window_params = [{pipeline_mode = #tpu.pipeline_mode<synchronous>, transform_indices = @transform_0, window_bounds = array<i64: 16, 32>}, {pipeline_mode = #tpu.pipeline_mode<synchronous>, transform_indices = @transform_1, window_bounds = array<i64: 16, 32>}, {pipeline_mode = #tpu.pipeline_mode<synchronous>, transform_indices = @transform_2, window_bounds = array<i64: 32, 32>}, {pipeline_mode = #tpu.pipeline_mode<synchronous>, transform_indices = @transform_3, window_bounds = array<i64: 32, 64>}, {pipeline_mode = #tpu.pipeline_mode<synchronous>, transform_indices = @transform_4, window_bounds = array<i64: 32, 32>}, {pipeline_mode = #tpu.pipeline_mode<synchronous>, transform_indices = @transform_5, window_bounds = array<i64: 1, 32>}, {pipeline_mode = #tpu.pipeline_mode<synchronous>, transform_indices = @transform_6, window_bounds = array<i64: 1, 32>}, {pipeline_mode = #tpu.pipeline_mode<synchronous>, transform_indices = @transform_7, window_bounds = array<i64: 32, 64>}, {pipeline_mode = #tpu.pipeline_mode<synchronous>, transform_indices = @transform_8, window_bounds = array<i64: 32, 64>}, {pipeline_mode = #tpu.pipeline_mode<synchronous>, transform_indices = @transform_9, window_bounds = array<i64: 64, 32>}, {pipeline_mode = #tpu.pipeline_mode<synchronous>, transform_indices = @transform_10, window_bounds = array<i64: 1, 32>}, {pipeline_mode = #tpu.pipeline_mode<synchronous>, transform_indices = @transform_11, window_bounds = array<i64: 1, 32>}, {pipeline_mode = #tpu.pipeline_mode<synchronous>, transform_indices = @transform_12, window_bounds = array<i64: 16, 32>}]} {
    %c0 = arith.constant 0 : index
    %c0_0 = arith.constant 0 : index
    %0 = vector.load %arg1[%c0, %c0_0] : memref<16x32xf32, #tpu.memory_space<vmem>>, vector<16x32xf32>
    %c0_1 = arith.constant 0 : index
    %c0_2 = arith.constant 0 : index
    %1 = vector.load %arg2[%c0_1, %c0_2] : memref<16x32xf32, #tpu.memory_space<vmem>>, vector<16x32xf32>
    %c0_3 = arith.constant 0 : index
    %c0_4 = arith.constant 0 : index
    %2 = vector.load %arg3[%c0_3, %c0_4] : memref<32x32xf32, #tpu.memory_space<vmem>>, vector<32x32xf32>
    %cst = arith.constant dense<0.000000e+00> : vector<16x32xf32>
    %3 = tpu.matmul %0, %2, %cst {dimension_numbers = #tpu.dot_dimension_numbers<[1], [0], [0], [1], [0, 0, 1, 1], [], []>} : vector<16x32xf32>, vector<32x32xf32>, vector<16x32xf32> -> vector<16x32xf32>
    %c0_5 = arith.constant 0 : index
    %c0_6 = arith.constant 0 : index
    %4 = vector.load %arg4[%c0_5, %c0_6] : memref<32x64xf32, #tpu.memory_space<vmem>>, vector<32x64xf32>
    %cst_7 = arith.constant dense<0.000000e+00> : vector<16x64xf32>
    %5 = tpu.matmul %1, %4, %cst_7 {dimension_numbers = #tpu.dot_dimension_numbers<[1], [0], [0], [1], [0, 0, 1, 1], [], []>} : vector<16x32xf32>, vector<32x64xf32>, vector<16x64xf32> -> vector<16x64xf32>
    %6 = vector.extract_strided_slice %5 {offsets = [0, 0], sizes = [16, 32], strides = [1, 1]} : vector<16x64xf32> to vector<16x32xf32>
    %7 = vector.extract_strided_slice %5 {offsets = [0, 32], sizes = [16, 32], strides = [1, 1]} : vector<16x64xf32> to vector<16x32xf32>
    %cst_8 = arith.constant 1.000000e+00 : f32
    %8 = vector.broadcast %cst_8 : f32 to vector<8x1xf32>
    %9 = vector.extract_strided_slice %3 {offsets = [0, 0], sizes = [8, 32], strides = [1, 1]} : vector<16x32xf32> to vector<8x32xf32>
    %cst_9 = arith.constant 0.000000e+00 : f32
    %10 = vector.broadcast %cst_9 : f32 to vector<8x32xf32>
    %11 = arith.cmpf ogt, %9, %10 : vector<8x32xf32>
    %cst_10 = arith.constant 1.000000e+00 : f32
    %12 = vector.broadcast %cst_10 : f32 to vector<8x32xf32>
    %13 = arith.addf %9, %12 : vector<8x32xf32>
    %14 = math.exp %9 : vector<8x32xf32>
    %15 = arith.select %11, %13, %14 : vector<8x32xi1>, vector<8x32xf32>
    %16 = vector.extract_strided_slice %6 {offsets = [0, 0], sizes = [8, 32], strides = [1, 1]} : vector<16x32xf32> to vector<8x32xf32>
    %cst_11 = arith.constant 0.000000e+00 : f32
    %17 = vector.broadcast %cst_11 : f32 to vector<8x32xf32>
    %18 = arith.cmpf ogt, %16, %17 : vector<8x32xf32>
    %cst_12 = arith.constant 1.000000e+00 : f32
    %19 = vector.broadcast %cst_12 : f32 to vector<8x32xf32>
    %20 = arith.addf %16, %19 : vector<8x32xf32>
    %21 = math.exp %16 : vector<8x32xf32>
    %22 = arith.select %18, %20, %21 : vector<8x32xi1>, vector<8x32xf32>
    %23 = vector.extract_strided_slice %7 {offsets = [0, 0], sizes = [8, 32], strides = [1, 1]} : vector<16x32xf32> to vector<8x32xf32>
    %24 = tpu.concatenate %23, %8 in 1 : vector<8x32xf32>, vector<8x1xf32> -> vector<8x33xf32>
    %25 = tpu.transpose %22, [1, 0] : vector<8x32xf32> -> vector<32x8xf32>
    %cst_13 = arith.constant dense<0.000000e+00> : vector<32x33xf32>
    %26 = tpu.matmul %25, %24, %cst_13 {dimension_numbers = #tpu.dot_dimension_numbers<[1], [0], [0], [1], [0, 0, 1, 1], [], []>} : vector<32x8xf32>, vector<8x33xf32>, vector<32x33xf32> -> vector<32x33xf32>
    %cst_14 = arith.constant dense<0.000000e+00> : vector<8x33xf32>
    %27 = tpu.matmul %15, %26, %cst_14 {dimension_numbers = #tpu.dot_dimension_numbers<[1], [0], [0], [1], [0, 0, 1, 1], [], []>} : vector<8x32xf32>, vector<32x33xf32>, vector<8x33xf32> -> vector<8x33xf32>
    %28 = vector.extract_strided_slice %27 {offsets = [0, 0], sizes = [8, 32], strides = [1, 1]} : vector<8x33xf32> to vector<8x32xf32>
    %29 = vector.extract_strided_slice %27 {offsets = [0, 32], sizes = [8, 1], strides = [1, 1]} : vector<8x33xf32> to vector<8x1xf32>
    %cst_15 = arith.constant 1.250000e-07 : f32
    %30 = vector.broadcast %cst_15 : f32 to vector<8x1xf32>
    %31 = arith.addf %29, %30 : vector<8x1xf32>
    %32 = vector.broadcast %31 : vector<8x1xf32> to vector<8x32xf32>
    %33 = arith.divf %28, %32 : vector<8x32xf32>
    %34 = vector.extract_strided_slice %3 {offsets = [8, 0], sizes = [8, 32], strides = [1, 1]} : vector<16x32xf32> to vector<8x32xf32>
    %cst_16 = arith.constant 0.000000e+00 : f32
    %35 = vector.broadcast %cst_16 : f32 to vector<8x32xf32>
    %36 = arith.cmpf ogt, %34, %35 : vector<8x32xf32>
    %cst_17 = arith.constant 1.000000e+00 : f32
    %37 = vector.broadcast %cst_17 : f32 to vector<8x32xf32>
    %38 = arith.addf %34, %37 : vector<8x32xf32>
    %39 = math.exp %34 : vector<8x32xf32>
    %40 = arith.select %36, %38, %39 : vector<8x32xi1>, vector<8x32xf32>
    %41 = vector.extract_strided_slice %6 {offsets = [8, 0], sizes = [8, 32], strides = [1, 1]} : vector<16x32xf32> to vector<8x32xf32>
    %cst_18 = arith.constant 0.000000e+00 : f32
    %42 = vector.broadcast %cst_18 : f32 to vector<8x32xf32>
    %43 = arith.cmpf ogt, %41, %42 : vector<8x32xf32>
    %cst_19 = arith.constant 1.000000e+00 : f32
    %44 = vector.broadcast %cst_19 : f32 to vector<8x32xf32>
    %45 = arith.addf %41, %44 : vector<8x32xf32>
    %46 = math.exp %41 : vector<8x32xf32>
    %47 = arith.select %43, %45, %46 : vector<8x32xi1>, vector<8x32xf32>
    %48 = vector.extract_strided_slice %7 {offsets = [8, 0], sizes = [8, 32], strides = [1, 1]} : vector<16x32xf32> to vector<8x32xf32>
    %49 = tpu.concatenate %48, %8 in 1 : vector<8x32xf32>, vector<8x1xf32> -> vector<8x33xf32>
    %50 = tpu.transpose %47, [1, 0] : vector<8x32xf32> -> vector<32x8xf32>
    %cst_20 = arith.constant dense<0.000000e+00> : vector<32x33xf32>
    %51 = tpu.matmul %50, %49, %cst_20 {dimension_numbers = #tpu.dot_dimension_numbers<[1], [0], [0], [1], [0, 0, 1, 1], [], []>} : vector<32x8xf32>, vector<8x33xf32>, vector<32x33xf32> -> vector<32x33xf32>
    %cst_21 = arith.constant dense<0.000000e+00> : vector<8x33xf32>
    %52 = tpu.matmul %40, %51, %cst_21 {dimension_numbers = #tpu.dot_dimension_numbers<[1], [0], [0], [1], [0, 0, 1, 1], [], []>} : vector<8x32xf32>, vector<32x33xf32>, vector<8x33xf32> -> vector<8x33xf32>
    %53 = vector.extract_strided_slice %52 {offsets = [0, 0], sizes = [8, 32], strides = [1, 1]} : vector<8x33xf32> to vector<8x32xf32>
    %54 = vector.extract_strided_slice %52 {offsets = [0, 32], sizes = [8, 1], strides = [1, 1]} : vector<8x33xf32> to vector<8x1xf32>
    %cst_22 = arith.constant 1.250000e-07 : f32
    %55 = vector.broadcast %cst_22 : f32 to vector<8x1xf32>
    %56 = arith.addf %54, %55 : vector<8x1xf32>
    %57 = vector.broadcast %56 : vector<8x1xf32> to vector<8x32xf32>
    %58 = arith.divf %53, %57 : vector<8x32xf32>
    %59 = tpu.concatenate %33, %58 in 0 : vector<8x32xf32>, vector<8x32xf32> -> vector<16x32xf32>
    %c0_23 = arith.constant 0 : index
    %c0_24 = arith.constant 0 : index
    %60 = vector.load %arg5[%c0_23, %c0_24] : memref<32x32xf32, #tpu.memory_space<vmem>>, vector<32x32xf32>
    %cst_25 = arith.constant dense<0.000000e+00> : vector<16x32xf32>
    %61 = tpu.matmul %59, %60, %cst_25 {dimension_numbers = #tpu.dot_dimension_numbers<[1], [0], [0], [1], [0, 0, 1, 1], [], []>} : vector<16x32xf32>, vector<32x32xf32>, vector<16x32xf32> -> vector<16x32xf32>
    %c0_26 = arith.constant 0 : index
    %c0_27 = arith.constant 0 : index
    %62 = vector.load %arg6[%c0_26, %c0_27] : memref<1x32xf32, #tpu.memory_space<vmem>>, vector<1x32xf32>
    %c0_28 = arith.constant 0 : index
    %c0_29 = arith.constant 0 : index
    %63 = vector.load %arg7[%c0_28, %c0_29] : memref<1x32xf32, #tpu.memory_space<vmem>>, vector<1x32xf32>
    %cst_30 = arith.constant dense<0.000000e+00> : vector<16xf32>
    %64 = vector.multi_reduction <add>, %61, %cst_30 [1] : vector<16x32xf32> to vector<16xf32>
    %65 = vector.shape_cast %64 : vector<16xf32> to vector<16x1xf32>
    %cst_31 = arith.constant 3.200000e+01 : f32
    %66 = vector.broadcast %cst_31 : f32 to vector<16x1xf32>
    %67 = arith.divf %65, %66 : vector<16x1xf32>
    %68 = vector.broadcast %67 : vector<16x1xf32> to vector<16x32xf32>
    %69 = arith.subf %61, %68 : vector<16x32xf32>
    %70 = arith.mulf %69, %69 : vector<16x32xf32>
    %cst_32 = arith.constant dense<0.000000e+00> : vector<16xf32>
    %71 = vector.multi_reduction <add>, %70, %cst_32 [1] : vector<16x32xf32> to vector<16xf32>
    %72 = vector.shape_cast %71 : vector<16xf32> to vector<16x1xf32>
    %cst_33 = arith.constant 3.200000e+01 : f32
    %73 = vector.broadcast %cst_33 : f32 to vector<16x1xf32>
    %74 = arith.divf %72, %73 : vector<16x1xf32>
    %75 = vector.broadcast %67 : vector<16x1xf32> to vector<16x32xf32>
    %76 = arith.subf %61, %75 : vector<16x32xf32>
    %cst_34 = arith.constant 9.99999974E-6 : f32
    %77 = vector.broadcast %cst_34 : f32 to vector<16x1xf32>
    %78 = arith.addf %74, %77 : vector<16x1xf32>
    %79 = math.rsqrt %78 : vector<16x1xf32>
    %80 = vector.broadcast %79 : vector<16x1xf32> to vector<16x32xf32>
    %81 = arith.mulf %76, %80 : vector<16x32xf32>
    %82 = vector.broadcast %62 : vector<1x32xf32> to vector<16x32xf32>
    %83 = arith.mulf %81, %82 : vector<16x32xf32>
    %84 = vector.broadcast %63 : vector<1x32xf32> to vector<16x32xf32>
    %85 = arith.addf %83, %84 : vector<16x32xf32>
    %c0_35 = arith.constant 0 : index
    %c0_36 = arith.constant 0 : index
    %86 = vector.load %arg8[%c0_35, %c0_36] : memref<32x64xf32, #tpu.memory_space<vmem>>, vector<32x64xf32>
    %cst_37 = arith.constant dense<0.000000e+00> : vector<16x64xf32>
    %87 = tpu.matmul %0, %86, %cst_37 {dimension_numbers = #tpu.dot_dimension_numbers<[1], [0], [0], [1], [0, 0, 1, 1], [], []>} : vector<16x32xf32>, vector<32x64xf32>, vector<16x64xf32> -> vector<16x64xf32>
    %c0_38 = arith.constant 0 : index
    %c0_39 = arith.constant 0 : index
    %88 = vector.load %arg9[%c0_38, %c0_39] : memref<32x64xf32, #tpu.memory_space<vmem>>, vector<32x64xf32>
    %cst_40 = arith.constant dense<0.000000e+00> : vector<16x64xf32>
    %89 = tpu.matmul %85, %88, %cst_40 {dimension_numbers = #tpu.dot_dimension_numbers<[1], [0], [0], [1], [0, 0, 1, 1], [], []>} : vector<16x32xf32>, vector<32x64xf32>, vector<16x64xf32> -> vector<16x64xf32>
    %90 = arith.addf %87, %89 : vector<16x64xf32>
    %cst_41 = arith.constant 0.000000e+00 : f32
    %91 = vector.broadcast %cst_41 : f32 to vector<16x64xf32>
    %92 = arith.maximumf %90, %91 : vector<16x64xf32>
    %c0_42 = arith.constant 0 : index
    %c0_43 = arith.constant 0 : index
    %93 = vector.load %arg10[%c0_42, %c0_43] : memref<64x32xf32, #tpu.memory_space<vmem>>, vector<64x32xf32>
    %cst_44 = arith.constant dense<0.000000e+00> : vector<16x32xf32>
    %94 = tpu.matmul %92, %93, %cst_44 {dimension_numbers = #tpu.dot_dimension_numbers<[1], [0], [0], [1], [0, 0, 1, 1], [], []>} : vector<16x64xf32>, vector<64x32xf32>, vector<16x32xf32> -> vector<16x32xf32>
    %c0_45 = arith.constant 0 : index
    %c0_46 = arith.constant 0 : index
    %95 = vector.load %arg11[%c0_45, %c0_46] : memref<1x32xf32, #tpu.memory_space<vmem>>, vector<1x32xf32>
    %c0_47 = arith.constant 0 : index
    %c0_48 = arith.constant 0 : index
    %96 = vector.load %arg12[%c0_47, %c0_48] : memref<1x32xf32, #tpu.memory_space<vmem>>, vector<1x32xf32>
    %cst_49 = arith.constant dense<0.000000e+00> : vector<16xf32>
    %97 = vector.multi_reduction <add>, %94, %cst_49 [1] : vector<16x32xf32> to vector<16xf32>
    %98 = vector.shape_cast %97 : vector<16xf32> to vector<16x1xf32>
    %cst_50 = arith.constant 3.200000e+01 : f32
    %99 = vector.broadcast %cst_50 : f32 to vector<16x1xf32>
    %100 = arith.divf %98, %99 : vector<16x1xf32>
    %101 = vector.broadcast %100 : vector<16x1xf32> to vector<16x32xf32>
    %102 = arith.subf %94, %101 : vector<16x32xf32>
    %103 = arith.mulf %102, %102 : vector<16x32xf32>
    %cst_51 = arith.constant dense<0.000000e+00> : vector<16xf32>
    %104 = vector.multi_reduction <add>, %103, %cst_51 [1] : vector<16x32xf32> to vector<16xf32>
    %105 = vector.shape_cast %104 : vector<16xf32> to vector<16x1xf32>
    %cst_52 = arith.constant 3.200000e+01 : f32
    %106 = vector.broadcast %cst_52 : f32 to vector<16x1xf32>
    %107 = arith.divf %105, %106 : vector<16x1xf32>
    %108 = vector.broadcast %100 : vector<16x1xf32> to vector<16x32xf32>
    %109 = arith.subf %94, %108 : vector<16x32xf32>
    %cst_53 = arith.constant 9.99999974E-6 : f32
    %110 = vector.broadcast %cst_53 : f32 to vector<16x1xf32>
    %111 = arith.addf %107, %110 : vector<16x1xf32>
    %112 = math.rsqrt %111 : vector<16x1xf32>
    %113 = vector.broadcast %112 : vector<16x1xf32> to vector<16x32xf32>
    %114 = arith.mulf %109, %113 : vector<16x32xf32>
    %115 = vector.broadcast %95 : vector<1x32xf32> to vector<16x32xf32>
    %116 = arith.mulf %114, %115 : vector<16x32xf32>
    %117 = vector.broadcast %96 : vector<1x32xf32> to vector<16x32xf32>
    %118 = arith.addf %116, %117 : vector<16x32xf32>
    %119 = arith.addf %0, %118 : vector<16x32xf32>
    %c0_54 = arith.constant 0 : index
    %c0_55 = arith.constant 0 : index
    %120 = vector.load %arg13[%c0_54, %c0_55] : memref<16x32xf32, #tpu.memory_space<vmem>>, vector<16x32xf32>
    tpu.vector_store %arg13[%c0_54, %c0_55], %119 {strides = array<i32>} : memref<16x32xf32, #tpu.memory_space<vmem>>, vector<16x32xf32>,
    return
  }
  func.func @transform_0(%arg0: i32) -> (i32, i32) {
    %c0_i32 = arith.constant 0 : i32
    %c0_i32_0 = arith.constant 0 : i32
    %c0_i32_1 = arith.constant 0 : i32
    return %c0_i32, %c0_i32_0 : i32, i32
  }
  func.func @transform_1(%arg0: i32) -> (i32, i32) {
    %c0_i32 = arith.constant 0 : i32
    %c0_i32_0 = arith.constant 0 : i32
    %c0_i32_1 = arith.constant 0 : i32
    return %c0_i32, %c0_i32_0 : i32, i32
  }
  func.func @transform_2(%arg0: i32) -> (i32, i32) {
    %c0_i32 = arith.constant 0 : i32
    %c0_i32_0 = arith.constant 0 : i32
    %c0_i32_1 = arith.constant 0 : i32
    return %c0_i32, %c0_i32_0 : i32, i32
  }
  func.func @transform_3(%arg0: i32) -> (i32, i32) {
    %c0_i32 = arith.constant 0 : i32
    %c0_i32_0 = arith.constant 0 : i32
    %c0_i32_1 = arith.constant 0 : i32
    return %c0_i32, %c0_i32_0 : i32, i32
  }
  func.func @transform_4(%arg0: i32) -> (i32, i32) {
    %c0_i32 = arith.constant 0 : i32
    %c0_i32_0 = arith.constant 0 : i32
    %c0_i32_1 = arith.constant 0 : i32
    return %c0_i32, %c0_i32_0 : i32, i32
  }
  func.func @transform_5(%arg0: i32) -> (i32, i32) {
    %c0_i32 = arith.constant 0 : i32
    %c0_i32_0 = arith.constant 0 : i32
    %c0_i32_1 = arith.constant 0 : i32
    return %c0_i32, %c0_i32_0 : i32, i32
  }
  func.func @transform_6(%arg0: i32) -> (i32, i32) {
    %c0_i32 = arith.constant 0 : i32
    %c0_i32_0 = arith.constant 0 : i32
    %c0_i32_1 = arith.constant 0 : i32
    return %c0_i32, %c0_i32_0 : i32, i32
  }
  func.func @transform_7(%arg0: i32) -> (i32, i32) {
    %c0_i32 = arith.constant 0 : i32
    %c0_i32_0 = arith.constant 0 : i32
    %c0_i32_1 = arith.constant 0 : i32
    return %c0_i32, %c0_i32_0 : i32, i32
  }
  func.func @transform_8(%arg0: i32) -> (i32, i32) {
    %c0_i32 = arith.constant 0 : i32
    %c0_i32_0 = arith.constant 0 : i32
    %c0_i32_1 = arith.constant 0 : i32
    return %c0_i32, %c0_i32_0 : i32, i32
  }
  func.func @transform_9(%arg0: i32) -> (i32, i32) {
    %c0_i32 = arith.constant 0 : i32
    %c0_i32_0 = arith.constant 0 : i32
    %c0_i32_1 = arith.constant 0 : i32
    return %c0_i32, %c0_i32_0 : i32, i32
  }
  func.func @transform_10(%arg0: i32) -> (i32, i32) {
    %c0_i32 = arith.constant 0 : i32
    %c0_i32_0 = arith.constant 0 : i32
    %c0_i32_1 = arith.constant 0 : i32
    return %c0_i32, %c0_i32_0 : i32, i32
  }
  func.func @transform_11(%arg0: i32) -> (i32, i32) {
    %c0_i32 = arith.constant 0 : i32
    %c0_i32_0 = arith.constant 0 : i32
    %c0_i32_1 = arith.constant 0 : i32
    return %c0_i32, %c0_i32_0 : i32, i32
  }
  func.func @transform_12(%arg0: i32) -> (i32, i32) {
    %c0_i32 = arith.constant 0 : i32
    %c0_i32_0 = arith.constant 0 : i32
    %c0_i32_1 = arith.constant 0 : i32
    return %c0_i32, %c0_i32_0 : i32, i32
  }
}

</mosaic_0001>

<bundles_post_ra>
// kernel: cross_transformer.3
= control target key start
LH: loop header
LB: loop body
LE: loop exit
PB: predicated region body
PF: predicated region fallthrough
CT: control target
= control target key end

     0   :  { %vm49_vm0 = vcmask 261120   ;;  %vm263_vm3 = vcmask 64512   ;;  %v1330_v28 = vmov 0.0   ;;  %vm1331_vm4 = vmmov 0   ;;  %s1554_s3 = inlined_call_operand.vmem [shape: f32[32,64], index: 3, kind: input, shape index: {}]   ;;  %s1555_s1 = inlined_call_operand.vmem [shape: f32[16,32], index: 1, kind: input, shape index: {}, may-alias: {0,1}]   ;;  %s1556_s2 = inlined_call_operand.vmem [shape: f32[32,32], index: 2, kind: input, shape index: {}]   ;;  %s1557_s0 = inlined_call_operand.vmem [shape: f32[16,32], index: 0, kind: input, shape index: {}, may-alias: {0,1}]   ;;  %s1558_s4 = inlined_call_operand.vmem [shape: f32[32,32], index: 4, kind: input, shape index: {}]   ;;  %s1559_s7 = inlined_call_operand.vmem [shape: f32[32,64], index: 7, kind: input, shape index: {}]   ;;  %s1560_s8 = inlined_call_operand.vmem [shape: f32[32,64], index: 8, kind: input, shape index: {}]   ;;  %s1561_s9 = inlined_call_operand.vmem [shape: f32[64,32], index: 9, kind: input, shape index: {}]   ;;  %s1562_s5 = inlined_call_operand.vmem [shape: f32[1,32], index: 5, kind: input, shape index: {}]   ;;  %s1563_s6 = inlined_call_operand.vmem [shape: f32[1,32], index: 6, kind: input, shape index: {}]   ;;  %s1564_s10 = inlined_call_operand.vmem [shape: f32[1,32], index: 10, kind: input, shape index: {}]   ;;  %s1565_s11 = inlined_call_operand.vmem [shape: f32[1,32], index: 11, kind: input, shape index: {}]   ;;  %s1566_s12 = inlined_call_operand.vmem [shape: f32[16,32], index: 12, kind: output, shape index: {}]  }
   0x1   :  { %v134_v0 = vld [vmem:[%s1554_s3 + $0x18] sm:$0xff]  ;;  %v133_v1 = vld [vmem:[%s1554_s3 + $0x10] sm:$0xff]  ;;  %v43_v2 = vld [vmem:[%s1555_s1] sm:$0xff]  ;;  %v1332_v45 = vmov 32   ;;  %vm971_vm7 = vcmask 523264  }
   0x2   :  { %1202 = vmatprep.subr.mxu1 %v134_v0  ;;  %v132_v3 = vld [vmem:[%s1554_s3 + $0x8] sm:$0xff]  ;;  %1210 = vmatprep.mubr.msk.f32.mxu1 %vm49_vm0, %v43_v2  ;;  %v131_v4 = vld [vmem:[%s1554_s3] sm:$0xff]  ;;  %v48_v6 = vld [vmem:[%s1556_s2 + $0x18] sm:$0xff] }
   0x3   :  { %1203 = vmatpush3.msra.mxu1 %v134_v0  ;;  %v44_v5 = vld [vmem:[%s1555_s1 + $0x8] sm:$0xff]  ;;  %v47_v7 = vld [vmem:[%s1556_s2 + $0x10] sm:$0xff]  ;;  %1191 = vmatprep.subr.mxu0 %v48_v6  ;;  %v45_v9 = vld [vmem:[%s1556_s2] sm:$0xff] }
   0x4   :  { %1204 = vmatprep.subr.mxu1 %v133_v1  ;;  %1192 = vmatpush3.msra.mxu0 %v48_v6  ;;  %v46_v8 = vld [vmem:[%s1556_s2 + $0x8] sm:$0xff]  ;;  %v1433_v10 = vld [vmem:[%s1557_s0] sm:$0xff]  ;;  %s1329_s2 = smov 96   ;;  %v670_v63 = vld [vmem:[%s1558_s4 + $0x18] sm:$0xff] }
   0x5   :  { %1205 = vmatpush3.msra.mxu1 %v133_v1  ;;  %1193 = vmatprep.subr.mxu0 %v47_v7  ;;  %v1440_v11 = vld [vmem:[%s1557_s0 + $0x8] sm:$0xff]  ;;  %v669_v0 = vld [vmem:[%s1558_s4 + $0x10] sm:$0xff]  ;;  %v667_v2 = vld [vmem:[%s1558_s4] sm:$0xff] }
   0x6   :  { %1206 = vmatprep.subr.mxu1 %v132_v3  ;;  %1194 = vmatpush3.msra.mxu0 %v47_v7  ;;  %v668_v1 = vld [vmem:[%s1558_s4 + $0x8] sm:$0xff] }
   0x7   :  { %1207 = vmatpush3.msra.mxu1 %v132_v3  ;;  %1195 = vmatprep.subr.mxu0 %v46_v8 }
   0x8   :  { %1208 = vmatprep.subr.mxu1 %v131_v4  ;;  %1196 = vmatpush3.msra.mxu0 %v46_v8 }
   0x9   :  { %1209 = vmatpush3.msra.mxu1 %v131_v4  ;;  %1197 = vmatprep.subr.mxu0 %v45_v9 }
   0xa   :  { %1211 = vmatmul.mubr.msk.f32.vlgmr.msra.gmra.mxu1 %vm49_vm0, %v44_v5  ;;  %1198 = vmatpush3.msra.mxu0 %v45_v9 }
   0xb   :  { %1199 = vmatprep.mubr.msk.f32.mxu0 %vm49_vm0, %v1433_v10  ;;  %1240 = vmatprep.subr.mxu1 %v1330_v28 }
   0xc   :  { %1200 = vmatmul.mubr.msk.f32.vlgmr.msra.gmra.mxu0 %vm49_vm0, %v1440_v11  ;;  %1248 = vmatprep.mubr.msk.f32.mxu1 %vm1331_vm4, %v1330_v28 }
  0xca   :  { %v1212_v12 = vpop.f32.mrf.mxu1 }
  0xcb   :  { %453 = vrot.lane.b32.xlu1 %v1212_v12, %s1329_s2  ;;  %v449_v15 = vmul.f32 1.442695, %v1212_v12  ;;  %v448_v20 = vadd.f32 1.0, %v1212_v12  ;;  %vm447_vm2 = vcmp.gt.f32.partialorder %v1212_v12, 0.0 }
  0xcc   :  { %v207_v13 = vpop.f32.mrf.mxu1  ;;  %v1201_v29 = vpop.f32.mrf.mxu0 }
  0xcd   :  { %227 = vrot.lane.b32.xlu0 %v207_v13, %s1329_s2  ;;  %v223_v14 = vmul.f32 1.442695, %v207_v13  ;;  %v222_v17 = vadd.f32 1.0, %v207_v13  ;;  %vm221_vm1 = vcmp.gt.f32.partialorder %v207_v13, 0.0  ;;  %v444_v46 = vmul.f32 1.442695, %v1201_v29 }
  0xce   :  { %v122_v30 = vpop.f32.mrf.mxu0  ;;  %v443_v54 = vadd.f32 1.0, %v1201_v29  ;;  %vm442_vm6 = vcmp.gt.f32.partialorder %v1201_v29, 0.0  ;;  %v801_v29 = vld [vmem:[%s1560_s8] sm:$0xff] }
  0xcf   :  { %1309 = vpow2.f32 %v223_v14  ;;  %v218_v31 = vmul.f32 1.442695, %v122_v30  ;;  %v217_v39 = vadd.f32 1.0, %v122_v30  ;;  %vm216_vm5 = vcmp.gt.f32.partialorder %v122_v30, 0.0  ;;  %v970_v30 = vld [vmem:[%s1561_s9 + $0x38] sm:$0xff] }
  0xd0   :  { %1311 = vpow2.f32 %v449_v15 }
  0xd1   :  { %1313 = vpow2.f32 %v218_v31 }
  0xd2   :  { %1315 = vpow2.f32 %v444_v46 }
  0xdc   :  { %v1310_v16 = vpop.eup %1309 }
  0xdd   :  { %v225_v18 = vsel %vm221_vm1, %v222_v17, %v1310_v16  ;;  %v1312_v19 = vpop.eup %1311 }
  0xde   :  { %v451_v21 = vsel %vm447_vm2, %v448_v20, %v1312_v19  ;;  %v1314_v40 = vpop.eup %1313 }
  0xdf   :  { %v220_v42 = vsel %vm216_vm5, %v217_v39, %v1314_v40  ;;  %v1316_v55 = vpop.eup %1315  ;;  %v1122_v40 = vld [vmem:[%s1563_s6] ss:$0 sm:$0xff] }
  0xe0   :  { %v446_v56 = vsel %vm442_vm6, %v443_v54, %v1316_v55 }
  0xeb   :  { %231 = vxpose.xlu0.b32.start.end [1/1] (short) (narrow) %v225_v18, 32 }
  0xf4   :  { %457 = vxpose.xlu1.b32.start.end [1/1] (short) (narrow) %v451_v21, 32 }
 0x112   :  { %1308 = vset.pattern.permute.xlu1 %v1332_v45 }
 0x114   :  { %1307 = vset.pattern.permute.xlu0 %v1332_v45 }
 0x13d   :  { %v454_v32 = vpop.permute.xlu1 %453 }
 0x13e   :  { %v456_v41 = vsel %vm49_vm0, %v454_v32, 1.0 }
 0x13f   :  { %v228_v22 = vpop.permute.xlu0 %227 }
 0x140   :  { %v230_v23 = vsel %vm49_vm0, %v228_v22, 1.0  ;;  %v800_v22 = vld [vmem:[%s1559_s7 + $0x18] sm:$0xff] }
 0x141   :  { %1213 = vmatprep.subr.mxu0 %v230_v23 }
 0x142   :  { %1214 = vmatpush3.msra.mxu0 %v230_v23  ;;  %v804_v23 = vld [vmem:[%s1560_s8 + $0x18] sm:$0xff] }
 0x143   :  { %1221 = vmatprep.subr.mxu0 %v1330_v28 }
 0x167   :  { %v247_v24 = vpop.trf.xlu0 }
 0x168   :  { %1215 = vmatprep.mubr.msk.f32.mxu0 %vm263_vm3, %v247_v24  ;;  %v799_v24 = vld [vmem:[%s1559_s7 + $0x10] sm:$0xff] }
 0x16b   :  { %v248_v25 = vpop.trf.xlu0 }
 0x16c   :  { %1216 = vmatmul.mubr.msk.f32.vlgmr.msra.gmra.mxu0 %vm263_vm3, %v248_v25  ;;  %v803_v25 = vld [vmem:[%s1560_s8 + $0x10] sm:$0xff] }
 0x16f   :  { %v249_v26 = vpop.trf.xlu0 }
 0x170   :  { %1218 = vmatprep.mubr.msk.f32.mxu0 %vm263_vm3, %v249_v26  ;;  %v473_v34 = vpop.trf.xlu1  ;;  %v798_v26 = vld [vmem:[%s1559_s7 + $0x8] sm:$0xff] }
 0x173   :  { %v250_v27 = vpop.trf.xlu0 }
 0x174   :  { %1219 = vmatmul.mubr.msk.f32.gmra.mxu0 %vm263_vm3, %v250_v27  ;;  %v474_v37 = vpop.trf.xlu1  ;;  %v802_v27 = vld [vmem:[%s1560_s8 + $0x8] sm:$0xff] }
 0x175   :  { %1229 = vmatprep.mubr.msk.f32.mxu0 %vm1331_vm4, %v1330_v28 }
 0x178   :  { %v475_v43 = vpop.trf.xlu1 }
 0x17c   :  { %v476_v44 = vpop.trf.xlu1 }
 0x22c   :  { %v1217_v33 = vpop.f32.mrf.mxu0 }
 0x22e   :  { %v342_v35 = vpop.f32.mrf.mxu0 }
 0x234   :  { %v1220_v36 = vpop.f32.mrf.mxu0 }
 0x235   :  { %1222 = vmatpush3.msra.mxu0 %v1220_v36 }
 0x236   :  { %v352_v38 = vpop.f32.mrf.mxu0  ;;  %1223 = vmatprep.subr.mxu0 %v1330_v28 }
 0x237   :  { %1224 = vmatpush3.msra.mxu0 %v352_v38  ;;  %v1121_v38 = vld [vmem:[%s1562_s5] ss:$0 sm:$0xff] }
 0x238   :  { %1225 = vmatprep.subr.mxu0 %v1330_v28 }
 0x239   :  { %1226 = vmatpush3.msra.mxu0 %v1217_v33 }
 0x23a   :  { %1227 = vmatprep.subr.mxu0 %v1330_v28 }
 0x23b   :  { %1228 = vmatpush3.msra.mxu0 %v342_v35 }
 0x23c   :  { %1230 = vmatmul.mubr.msk.f32.vlgmr.msra.gmra.mxu0 %vm49_vm0, %v220_v42  ;;  %1232 = vmatprep.subr.mxu0 %v456_v41 }
 0x23d   :  { %1233 = vmatpush3.msra.mxu0 %v456_v41  ;;  %1234 = vmatprep.mubr.msk.f32.mxu0 %vm263_vm3, %v473_v34 }
 0x23e   :  { %1251 = vmatprep.subr.mxu0 %v670_v63 }
 0x240   :  { %1235 = vmatmul.mubr.msk.f32.vlgmr.msra.gmra.mxu0 %vm263_vm3, %v474_v37 }
 0x241   :  { %1237 = vmatprep.mubr.msk.f32.mxu0 %vm263_vm3, %v475_v43  ;;  %1252 = vmatpush3.msra.mxu0 %v670_v63 }
 0x242   :  { %1253 = vmatprep.subr.mxu0 %v669_v0 }
 0x243   :  { %1254 = vmatpush3.msra.mxu0 %v669_v0 }
 0x244   :  { %1238 = vmatmul.mubr.msk.f32.gmra.mxu0 %vm263_vm3, %v476_v44  ;;  %1255 = vmatprep.subr.mxu0 %v668_v1 }
 0x245   :  { %1256 = vmatpush3.msra.mxu0 %v668_v1 }
 0x246   :  { %1257 = vmatprep.subr.mxu0 %v667_v2 }
 0x247   :  { %1258 = vmatpush3.msra.mxu0 %v667_v2 }
 0x248   :  { %1273 = vmatprep.subr.mxu0 %v800_v22 }
 0x2fc   :  { %v430_v47 = vpop.f32.mrf.mxu0 }
 0x2fd   :  { %v434_v48 = vadd.f32 1.25e-07, %v430_v47 }
 0x2fe   :  { %v1231_v49 = vpop.f32.mrf.mxu0 }
 0x2ff   :  { %437 = vperm.xlu0 %1307, %v434_v48   ;;  %v968_v48 = vld [vmem:[%s1561_s9 + $0x28] sm:$0xff]  ;;  %v967_v49 = vld [vmem:[%s1561_s9 + $0x20] sm:$0xff] }
 0x300   :  { %v1236_v50 = vpop.f32.mrf.mxu0 }
 0x302   :  { %v567_v51 = vpop.f32.mrf.mxu0 }
 0x304   :  { %v1239_v52 = vpop.f32.mrf.mxu0 }
 0x305   :  { %1241 = vmatpush3.msra.mxu1 %v1239_v52  ;;  %v964_v52 = vld [vmem:[%s1561_s9 + $0x8] sm:$0xff] }
 0x306   :  { %v577_v53 = vpop.f32.mrf.mxu0  ;;  %1242 = vmatprep.subr.mxu1 %v1330_v28 }
 0x307   :  { %1243 = vmatpush3.msra.mxu1 %v577_v53  ;;  %v963_v53 = vld [vmem:[%s1561_s9] sm:$0xff] }
 0x308   :  { %1244 = vmatprep.subr.mxu1 %v1330_v28 }
 0x309   :  { %1245 = vmatpush3.msra.mxu1 %v1236_v50  ;;  %v966_v50 = vld [vmem:[%s1561_s9 + $0x18] sm:$0xff] }
 0x30a   :  { %1246 = vmatprep.subr.mxu1 %v1330_v28  ;;  %v797_v28 = vld [vmem:[%s1559_s7] sm:$0xff] }
 0x30b   :  { %1247 = vmatpush3.msra.mxu1 %v567_v51  ;;  %v965_v51 = vld [vmem:[%s1561_s9 + $0x10] sm:$0xff] }
 0x30c   :  { %1249 = vmatmul.mubr.msk.f32.vlgmr.msra.gmra.mxu1 %vm49_vm0, %v446_v56  ;;  %1262 = vmatprep.subr.mxu1 %v804_v23 }
 0x30d   :  { %1263 = vmatpush3.msra.mxu1 %v804_v23 }
 0x30e   :  { %1264 = vmatprep.subr.mxu1 %v803_v25 }
 0x30f   :  { %1265 = vmatpush3.msra.mxu1 %v803_v25 }
 0x310   :  { %1266 = vmatprep.subr.mxu1 %v802_v27 }
 0x311   :  { %1267 = vmatpush3.msra.mxu1 %v802_v27 }
 0x312   :  { %1268 = vmatprep.subr.mxu1 %v801_v29 }
 0x313   :  { %1269 = vmatpush3.msra.mxu1 %v801_v29 }
 0x314   :  { %1284 = vmatprep.subr.mxu1 %v970_v30 }
 0x37a   :  { %v438_v57 = vpop.permute.xlu0 %437 }
 0x37b   :  { %1317 = vrcp.f32 %v438_v57 }
 0x388   :  { %v1318_v58 = vpop.eup %1317 }
 0x389   :  { %v441_v59 = vmul.f32 %v1318_v58, %v430_v47  ;;  %v969_v47 = vld [vmem:[%s1561_s9 + $0x30] sm:$0xff] }
 0x38b   :  { %1259 = vmatprep.mubr.msk.f32.mxu0 %vm49_vm0, %v441_v59 }
 0x3cc   :  { %v655_v60 = vpop.f32.mrf.mxu1 }
 0x3cd   :  { %v659_v61 = vadd.f32 1.25e-07, %v655_v60 }
 0x3ce   :  { %v1250_v62 = vpop.f32.mrf.mxu1 }
 0x3cf   :  { %662 = vperm.xlu1 %1308, %v659_v61  }
 0x44a   :  { %v663_v3 = vpop.permute.xlu1 %662 }
 0x44b   :  { %1319 = vrcp.f32 %v663_v3 }
 0x458   :  { %v1320_v4 = vpop.eup %1319 }
 0x459   :  { %v666_v5 = vmul.f32 %v1320_v4, %v655_v60 }
 0x45b   :  { %1260 = vmatmul.mubr.msk.f32.vlgmr.msra.gmra.mxu0 %vm49_vm0, %v666_v5 }
 0x45c   :  { %1281 = vmatprep.mubr.msk.f32.mxu0 %vm49_vm0, %v1433_v10  ;;  %1274 = vmatpush3.msra.mxu0 %v800_v22 }
 0x45d   :  { %1275 = vmatprep.subr.mxu0 %v799_v24 }
 0x45e   :  { %1276 = vmatpush3.msra.mxu0 %v799_v24  ;;  %v1130_v24 = vld [vmem:[%s1565_s11] ss:$0 sm:$0xff] }
 0x45f   :  { %1277 = vmatprep.subr.mxu0 %v798_v26 }
 0x460   :  { %1278 = vmatpush3.msra.mxu0 %v798_v26 }
 0x461   :  { %1279 = vmatprep.subr.mxu0 %v797_v28 }
 0x462   :  { %1280 = vmatpush3.msra.mxu0 %v797_v28 }
 0x463   :  { %1282 = vmatmul.mubr.msk.f32.vlgmr.msra.gmra.mxu0 %vm49_vm0, %v1440_v11 }
 0x51b   :  { %v1261_v6 = vpop.f32.mrf.mxu0 }
 0x51c   :  { %v757_v7 = vsel %vm49_vm0, %v1261_v6, 0.0 }
 0x51d   :  { %758 = vadd.xlane.f32.xlu1 %v757_v7  ;;  %v743_v8 = vpop.f32.mrf.mxu0 }
 0x51e   :  { %v754_v9 = vsel %vm49_vm0, %v743_v8, 0.0 }
 0x51f   :  { %755 = vadd.xlane.f32.xlu0 %v754_v9 }
 0x523   :  { %v1283_v54 = vpop.f32.mrf.mxu0 }
 0x525   :  { %v952_v57 = vpop.f32.mrf.mxu0 }
 0x5a6   :  { %v759_v12 = vpop.xlane.xlu1 %758 }
 0x5a7   :  { %v762_v13 = vmul.f32 0.03125, %v759_v12 }
 0x5a8   :  { %v756_v14 = vpop.xlane.xlu0 %755 }
 0x5a9   :  { %v761_v15 = vmul.f32 0.03125, %v756_v14  ;;  %v764_v16 = vsub.f32 %v1261_v6, %v762_v13 }
 0x5ab   :  { %v763_v17 = vsub.f32 %v743_v8, %v761_v15  ;;  %v766_v20 = vmul.f32 %v764_v16, %v764_v16 }
 0x5ad   :  { %v765_v18 = vmul.f32 %v763_v17, %v763_v17  ;;  %v770_v21 = vsel %vm49_vm0, %v766_v20, 0.0 }
 0x5af   :  { %v767_v19 = vsel %vm49_vm0, %v765_v18, 0.0 }
 0x5b0   :  { %768 = vadd.xlane.f32.xlu0 %v767_v19 }
 0x5b4   :  { %771 = vadd.xlane.f32.xlu0 %v770_v21  ;;  %v1129_v21 = vld [vmem:[%s1564_s10] ss:$0 sm:$0xff] }
 0x639   :  { %v769_v31 = vpop.xlane.xlu0 %768 }
 0x63a   :  { %v773_v32 = vmul.f32 0.03125, %v769_v31 }
 0x63c   :  { %v775_v33 = vadd.f32 1e-05, %v773_v32 }
 0x63d   :  { %v772_v34 = vpop.xlane.xlu0 %771 }
 0x63e   :  { %1321 = vrsqrt.f32 %v775_v33  ;;  %v774_v35 = vmul.f32 0.03125, %v772_v34 }
 0x640   :  { %v776_v36 = vadd.f32 1e-05, %v774_v35 }
 0x642   :  { %1323 = vrsqrt.f32 %v776_v36 }
 0x64b   :  { %v1322_v37 = vpop.eup %1321 }
 0x64c   :  { %v779_v39 = vmul.f32 %v1322_v37, %v763_v17 }
 0x64e   :  { %v787_v41 = vmul.f32 %v1121_v38, %v779_v39 }
 0x64f   :  { %v1324_v42 = vpop.eup %1323 }
 0x650   :  { %v780_v43 = vmul.f32 %v1324_v42, %v764_v16  ;;  %v795_v44 = vadd.f32 %v1122_v40, %v787_v41 }
 0x652   :  { %v788_v45 = vmul.f32 %v1121_v38, %v780_v43  ;;  %1270 = vmatprep.mubr.msk.f32.mxu1 %vm49_vm0, %v795_v44 }
 0x654   :  { %v796_v46 = vadd.f32 %v1122_v40, %v788_v45 }
 0x656   :  { %1271 = vmatmul.mubr.msk.f32.vlgmr.msra.gmra.mxu1 %vm49_vm0, %v796_v46 }
 0x657   :  { %1285 = vmatpush3.msra.mxu1 %v970_v30 }
 0x658   :  { %1286 = vmatprep.subr.mxu1 %v969_v47 }
 0x659   :  { %1287 = vmatpush3.msra.mxu1 %v969_v47 }
 0x65a   :  { %1288 = vmatprep.subr.mxu1 %v968_v48 }
 0x65b   :  { %1289 = vmatpush3.msra.mxu1 %v968_v48 }
 0x65c   :  { %1290 = vmatprep.subr.mxu1 %v967_v49 }
 0x65d   :  { %1291 = vmatpush3.msra.mxu1 %v967_v49 }
 0x65e   :  { %1292 = vmatprep.subr.mxu1 %v966_v50 }
 0x65f   :  { %1293 = vmatpush3.msra.mxu1 %v966_v50 }
 0x660   :  { %1294 = vmatprep.subr.mxu1 %v965_v51 }
 0x661   :  { %1295 = vmatpush3.msra.mxu1 %v965_v51 }
 0x662   :  { %1296 = vmatprep.subr.mxu1 %v964_v52 }
 0x663   :  { %1297 = vmatpush3.msra.mxu1 %v964_v52 }
 0x664   :  { %1298 = vmatprep.subr.mxu1 %v963_v53 }
 0x665   :  { %1299 = vmatpush3.msra.mxu1 %v963_v53 }
 0x716   :  { %v1272_v55 = vpop.f32.mrf.mxu1 }
 0x717   :  { %v958_v56 = vadd.f32 %v1283_v54, %v1272_v55 }
 0x718   :  { %v877_v58 = vpop.f32.mrf.mxu1 }
 0x719   :  { %v953_v59 = vadd.f32 %v952_v57, %v877_v58  ;;  %v962_v61 = vmax.f32 %v958_v56, 0.0 }
 0x71b   :  { %v961_v60 = vmax.f32 %v953_v59, 0.0 }
 0x71d   :  { %1300 = vmatprep.mubr.msk.f32.mxu1 %vm971_vm7, %v961_v60 }
 0x71e   :  { %1301 = vmatmul.mubr.msk.f32.vlgmr.msra.gmra.mxu1 %vm971_vm7, %v962_v61 }
 0x7de   :  { %v1302_v62 = vpop.f32.mrf.mxu1 }
 0x7df   :  { %v1058_v63 = vsel %vm49_vm0, %v1302_v62, 0.0 }
 0x7e0   :  { %1059 = vadd.xlane.f32.xlu0 %v1058_v63  ;;  %v1044_v0 = vpop.f32.mrf.mxu1 }
 0x7e1   :  { %v1055_v1 = vsel %vm49_vm0, %v1044_v0, 0.0 }
 0x7e2   :  { %1056 = vadd.xlane.f32.xlu1 %v1055_v1 }
 0x869   :  { %v1060_v2 = vpop.xlane.xlu0 %1059 }
 0x86a   :  { %v1062_v3 = vmul.f32 0.03125, %v1060_v2 }
 0x86b   :  { %v1057_v4 = vpop.xlane.xlu1 %1056 }
 0x86c   :  { %v1064_v5 = vsub.f32 %v1302_v62, %v1062_v3  ;;  %v1061_v6 = vmul.f32 0.03125, %v1057_v4 }
 0x86e   :  { %v1063_v7 = vsub.f32 %v1044_v0, %v1061_v6  ;;  %v1066_v8 = vmul.f32 %v1064_v5, %v1064_v5 }
 0x870   :  { %v1070_v9 = vsel %vm49_vm0, %v1066_v8, 0.0  ;;  %v1065_v12 = vmul.f32 %v1063_v7, %v1063_v7 }
 0x871   :  { %1071 = vadd.xlane.f32.xlu0 %v1070_v9 }
 0x872   :  { %v1067_v13 = vsel %vm49_vm0, %v1065_v12, 0.0 }
 0x873   :  { %1068 = vadd.xlane.f32.xlu1 %v1067_v13 }
 0x8fa   :  { %v1072_v14 = vpop.xlane.xlu0 %1071 }
 0x8fb   :  { %v1074_v15 = vmul.f32 0.03125, %v1072_v14 }
 0x8fc   :  { %v1069_v16 = vpop.xlane.xlu1 %1068 }
 0x8fd   :  { %v1076_v17 = vadd.f32 1e-05, %v1074_v15  ;;  %v1073_v18 = vmul.f32 0.03125, %v1069_v16 }
 0x8ff   :  { %1325 = vrsqrt.f32 %v1076_v17  ;;  %v1075_v19 = vadd.f32 1e-05, %v1073_v18 }
 0x901   :  { %1327 = vrsqrt.f32 %v1075_v19 }
 0x90c   :  { %v1326_v20 = vpop.eup %1325 }
 0x90d   :  { %v1080_v22 = vmul.f32 %v1326_v20, %v1064_v5 }
 0x90e   :  { %v1328_v23 = vpop.eup %1327 }
 0x90f   :  { %v1088_v25 = vmul.f32 %v1129_v21, %v1080_v22  ;;  %v1079_v26 = vmul.f32 %v1328_v23, %v1063_v7 }
 0x911   :  { %v1096_v27 = vadd.f32 %v1130_v24, %v1088_v25  ;;  %v1087_v28 = vmul.f32 %v1129_v21, %v1079_v26 }
 0x913   :  { %v1098_v29 = vadd.f32 %v1096_v27, %v1440_v11  ;;  %v1095_v30 = vadd.f32 %v1130_v24, %v1087_v28 }
 0x915   :  { %1100 = vst.msk [vmem:[%s1566_s12 + $0x8] sm:$0xff] %vm49_vm0, %v1098_v29  ;;  %v1097_v31 = vadd.f32 %v1095_v30, %v1433_v10 }
 0x917   :  { %1099 = vst.msk [vmem:[%s1566_s12] sm:$0xff] %vm49_vm0, %v1097_v31 }

// kernel: cross_transformer.2
= control target key start
LH: loop header
LB: loop body
LE: loop exit
PB: predicated region body
PF: predicated region fallthrough
CT: control target
= control target key end

     0   :  { %vm49_vm0 = vcmask 261120   ;;  %vm263_vm3 = vcmask 64512   ;;  %v1330_v28 = vmov 0.0   ;;  %vm1331_vm4 = vmmov 0   ;;  %s1554_s3 = inlined_call_operand.vmem [shape: f32[32,64], index: 3, kind: input, shape index: {}]   ;;  %s1555_s1 = inlined_call_operand.vmem [shape: f32[16,32], index: 1, kind: input, shape index: {}]   ;;  %s1556_s2 = inlined_call_operand.vmem [shape: f32[32,32], index: 2, kind: input, shape index: {}]   ;;  %s1557_s0 = inlined_call_operand.vmem [shape: f32[16,32], index: 0, kind: input, shape index: {}]   ;;  %s1558_s4 = inlined_call_operand.vmem [shape: f32[32,32], index: 4, kind: input, shape index: {}]   ;;  %s1559_s7 = inlined_call_operand.vmem [shape: f32[32,64], index: 7, kind: input, shape index: {}]   ;;  %s1560_s8 = inlined_call_operand.vmem [shape: f32[32,64], index: 8, kind: input, shape index: {}]   ;;  %s1561_s9 = inlined_call_operand.vmem [shape: f32[64,32], index: 9, kind: input, shape index: {}]   ;;  %s1562_s5 = inlined_call_operand.vmem [shape: f32[1,32], index: 5, kind: input, shape index: {}]   ;;  %s1563_s6 = inlined_call_operand.vmem [shape: f32[1,32], index: 6, kind: input, shape index: {}]   ;;  %s1564_s10 = inlined_call_operand.vmem [shape: f32[1,32], index: 10, kind: input, shape index: {}]   ;;  %s1565_s11 = inlined_call_operand.vmem [shape: f32[1,32], index: 11, kind: input, shape index: {}]   ;;  %s1566_s12 = inlined_call_operand.vmem [shape: f32[16,32], index: 12, kind: output, shape index: {}]  }
   0x1   :  { %v134_v0 = vld [vmem:[%s1554_s3 + $0x18] sm:$0xff]  ;;  %v133_v1 = vld [vmem:[%s1554_s3 + $0x10] sm:$0xff]  ;;  %v43_v2 = vld [vmem:[%s1555_s1] sm:$0xff]  ;;  %v1332_v45 = vmov 32   ;;  %vm971_vm7 = vcmask 523264  }
   0x2   :  { %1202 = vmatprep.subr.mxu1 %v134_v0  ;;  %v132_v3 = vld [vmem:[%s1554_s3 + $0x8] sm:$0xff]  ;;  %1210 = vmatprep.mubr.msk.f32.mxu1 %vm49_vm0, %v43_v2  ;;  %v131_v4 = vld [vmem:[%s1554_s3] sm:$0xff]  ;;  %v48_v6 = vld [vmem:[%s1556_s2 + $0x18] sm:$0xff] }
   0x3   :  { %1203 = vmatpush3.msra.mxu1 %v134_v0  ;;  %v44_v5 = vld [vmem:[%s1555_s1 + $0x8] sm:$0xff]  ;;  %v47_v7 = vld [vmem:[%s1556_s2 + $0x10] sm:$0xff]  ;;  %1191 = vmatprep.subr.mxu0 %v48_v6  ;;  %v45_v9 = vld [vmem:[%s1556_s2] sm:$0xff] }
   0x4   :  { %1204 = vmatprep.subr.mxu1 %v133_v1  ;;  %1192 = vmatpush3.msra.mxu0 %v48_v6  ;;  %v46_v8 = vld [vmem:[%s1556_s2 + $0x8] sm:$0xff]  ;;  %v1433_v10 = vld [vmem:[%s1557_s0] sm:$0xff]  ;;  %s1329_s2 = smov 96   ;;  %v670_v63 = vld [vmem:[%s1558_s4 + $0x18] sm:$0xff] }
   0x5   :  { %1205 = vmatpush3.msra.mxu1 %v133_v1  ;;  %1193 = vmatprep.subr.mxu0 %v47_v7  ;;  %v1440_v11 = vld [vmem:[%s1557_s0 + $0x8] sm:$0xff]  ;;  %v669_v0 = vld [vmem:[%s1558_s4 + $0x10] sm:$0xff]  ;;  %v667_v2 = vld [vmem:[%s1558_s4] sm:$0xff] }
   0x6   :  { %1206 = vmatprep.subr.mxu1 %v132_v3  ;;  %1194 = vmatpush3.msra.mxu0 %v47_v7  ;;  %v668_v1 = vld [vmem:[%s1558_s4 + $0x8] sm:$0xff] }
   0x7   :  { %1207 = vmatpush3.msra.mxu1 %v132_v3  ;;  %1195 = vmatprep.subr.mxu0 %v46_v8 }
   0x8   :  { %1208 = vmatprep.subr.mxu1 %v131_v4  ;;  %1196 = vmatpush3.msra.mxu0 %v46_v8 }
   0x9   :  { %1209 = vmatpush3.msra.mxu1 %v131_v4  ;;  %1197 = vmatprep.subr.mxu0 %v45_v9 }
   0xa   :  { %1211 = vmatmul.mubr.msk.f32.vlgmr.msra.gmra.mxu1 %vm49_vm0, %v44_v5  ;;  %1198 = vmatpush3.msra.mxu0 %v45_v9 }
   0xb   :  { %1199 = vmatprep.mubr.msk.f32.mxu0 %vm49_vm0, %v1433_v10  ;;  %1240 = vmatprep.subr.mxu1 %v1330_v28 }
   0xc   :  { %1200 = vmatmul.mubr.msk.f32.vlgmr.msra.gmra.mxu0 %vm49_vm0, %v1440_v11  ;;  %1248 = vmatprep.mubr.msk.f32.mxu1 %vm1331_vm4, %v1330_v28 }
  0xca   :  { %v1212_v12 = vpop.f32.mrf.mxu1 }
  0xcb   :  { %453 = vrot.lane.b32.xlu1 %v1212_v12, %s1329_s2  ;;  %v449_v15 = vmul.f32 1.442695, %v1212_v12  ;;  %v448_v20 = vadd.f32 1.0, %v1212_v12  ;;  %vm447_vm2 = vcmp.gt.f32.partialorder %v1212_v12, 0.0 }
  0xcc   :  { %v207_v13 = vpop.f32.mrf.mxu1  ;;  %v1201_v29 = vpop.f32.mrf.mxu0 }
  0xcd   :  { %227 = vrot.lane.b32.xlu0 %v207_v13, %s1329_s2  ;;  %v223_v14 = vmul.f32 1.442695, %v207_v13  ;;  %v222_v17 = vadd.f32 1.0, %v207_v13  ;;  %vm221_vm1 = vcmp.gt.f32.partialorder %v207_v13, 0.0  ;;  %v444_v46 = vmul.f32 1.442695, %v1201_v29 }
  0xce   :  { %v122_v30 = vpop.f32.mrf.mxu0  ;;  %v443_v54 = vadd.f32 1.0, %v1201_v29  ;;  %vm442_vm6 = vcmp.gt.f32.partialorder %v1201_v29, 0.0  ;;  %v801_v29 = vld [vmem:[%s1560_s8] sm:$0xff] }
  0xcf   :  { %1309 = vpow2.f32 %v223_v14  ;;  %v218_v31 = vmul.f32 1.442695, %v122_v30  ;;  %v217_v39 = vadd.f32 1.0, %v122_v30  ;;  %vm216_vm5 = vcmp.gt.f32.partialorder %v122_v30, 0.0  ;;  %v970_v30 = vld [vmem:[%s1561_s9 + $0x38] sm:$0xff] }
  0xd0   :  { %1311 = vpow2.f32 %v449_v15 }
  0xd1   :  { %1313 = vpow2.f32 %v218_v31 }
  0xd2   :  { %1315 = vpow2.f32 %v444_v46 }
  0xdc   :  { %v1310_v16 = vpop.eup %1309 }
  0xdd   :  { %v225_v18 = vsel %vm221_vm1, %v222_v17, %v1310_v16  ;;  %v1312_v19 = vpop.eup %1311 }
  0xde   :  { %v451_v21 = vsel %vm447_vm2, %v448_v20, %v1312_v19  ;;  %v1314_v40 = vpop.eup %1313 }
  0xdf   :  { %v220_v42 = vsel %vm216_vm5, %v217_v39, %v1314_v40  ;;  %v1316_v55 = vpop.eup %1315  ;;  %v1122_v40 = vld [vmem:[%s1563_s6] ss:$0 sm:$0xff] }
  0xe0   :  { %v446_v56 = vsel %vm442_vm6, %v443_v54, %v1316_v55 }
  0xeb   :  { %231 = vxpose.xlu0.b32.start.end [1/1] (short) (narrow) %v225_v18, 32 }
  0xf4   :  { %457 = vxpose.xlu1.b32.start.end [1/1] (short) (narrow) %v451_v21, 32 }
 0x112   :  { %1308 = vset.pattern.permute.xlu1 %v1332_v45 }
 0x114   :  { %1307 = vset.pattern.permute.xlu0 %v1332_v45 }
 0x13d   :  { %v454_v32 = vpop.permute.xlu1 %453 }
 0x13e   :  { %v456_v41 = vsel %vm49_vm0, %v454_v32, 1.0 }
 0x13f   :  { %v228_v22 = vpop.permute.xlu0 %227 }
 0x140   :  { %v230_v23 = vsel %vm49_vm0, %v228_v22, 1.0  ;;  %v800_v22 = vld [vmem:[%s1559_s7 + $0x18] sm:$0xff] }
 0x141   :  { %1213 = vmatprep.subr.mxu0 %v230_v23 }
 0x142   :  { %1214 = vmatpush3.msra.mxu0 %v230_v23  ;;  %v804_v23 = vld [vmem:[%s1560_s8 + $0x18] sm:$0xff] }
 0x143   :  { %1221 = vmatprep.subr.mxu0 %v1330_v28 }
 0x167   :  { %v247_v24 = vpop.trf.xlu0 }
 0x168   :  { %1215 = vmatprep.mubr.msk.f32.mxu0 %vm263_vm3, %v247_v24  ;;  %v799_v24 = vld [vmem:[%s1559_s7 + $0x10] sm:$0xff] }
 0x16b   :  { %v248_v25 = vpop.trf.xlu0 }
 0x16c   :  { %1216 = vmatmul.mubr.msk.f32.vlgmr.msra.gmra.mxu0 %vm263_vm3, %v248_v25  ;;  %v803_v25 = vld [vmem:[%s1560_s8 + $0x10] sm:$0xff] }
 0x16f   :  { %v249_v26 = vpop.trf.xlu0 }
 0x170   :  { %1218 = vmatprep.mubr.msk.f32.mxu0 %vm263_vm3, %v249_v26  ;;  %v473_v34 = vpop.trf.xlu1  ;;  %v798_v26 = vld [vmem:[%s1559_s7 + $0x8] sm:$0xff] }
 0x173   :  { %v250_v27 = vpop.trf.xlu0 }
 0x174   :  { %1219 = vmatmul.mubr.msk.f32.gmra.mxu0 %vm263_vm3, %v250_v27  ;;  %v474_v37 = vpop.trf.xlu1  ;;  %v802_v27 = vld [vmem:[%s1560_s8 + $0x8] sm:$0xff] }
 0x175   :  { %1229 = vmatprep.mubr.msk.f32.mxu0 %vm1331_vm4, %v1330_v28 }
 0x178   :  { %v475_v43 = vpop.trf.xlu1 }
 0x17c   :  { %v476_v44 = vpop.trf.xlu1 }
 0x22c   :  { %v1217_v33 = vpop.f32.mrf.mxu0 }
 0x22e   :  { %v342_v35 = vpop.f32.mrf.mxu0 }
 0x234   :  { %v1220_v36 = vpop.f32.mrf.mxu0 }
 0x235   :  { %1222 = vmatpush3.msra.mxu0 %v1220_v36 }
 0x236   :  { %v352_v38 = vpop.f32.mrf.mxu0  ;;  %1223 = vmatprep.subr.mxu0 %v1330_v28 }
 0x237   :  { %1224 = vmatpush3.msra.mxu0 %v352_v38  ;;  %v1121_v38 = vld [vmem:[%s1562_s5] ss:$0 sm:$0xff] }
 0x238   :  { %1225 = vmatprep.subr.mxu0 %v1330_v28 }
 0x239   :  { %1226 = vmatpush3.msra.mxu0 %v1217_v33 }
 0x23a   :  { %1227 = vmatprep.subr.mxu0 %v1330_v28 }
 0x23b   :  { %1228 = vmatpush3.msra.mxu0 %v342_v35 }
 0x23c   :  { %1230 = vmatmul.mubr.msk.f32.vlgmr.msra.gmra.mxu0 %vm49_vm0, %v220_v42  ;;  %1232 = vmatprep.subr.mxu0 %v456_v41 }
 0x23d   :  { %1233 = vmatpush3.msra.mxu0 %v456_v41  ;;  %1234 = vmatprep.mubr.msk.f32.mxu0 %vm263_vm3, %v473_v34 }
 0x23e   :  { %1251 = vmatprep.subr.mxu0 %v670_v63 }
 0x240   :  { %1235 = vmatmul.mubr.msk.f32.vlgmr.msra.gmra.mxu0 %vm263_vm3, %v474_v37 }
 0x241   :  { %1237 = vmatprep.mubr.msk.f32.mxu0 %vm263_vm3, %v475_v43  ;;  %1252 = vmatpush3.msra.mxu0 %v670_v63 }
 0x242   :  { %1253 = vmatprep.subr.mxu0 %v669_v0 }
 0x243   :  { %1254 = vmatpush3.msra.mxu0 %v669_v0 }
 0x244   :  { %1238 = vmatmul.mubr.msk.f32.gmra.mxu0 %vm263_vm3, %v476_v44  ;;  %1255 = vmatprep.subr.mxu0 %v668_v1 }
 0x245   :  { %1256 = vmatpush3.msra.mxu0 %v668_v1 }
 0x246   :  { %1257 = vmatprep.subr.mxu0 %v667_v2 }
 0x247   :  { %1258 = vmatpush3.msra.mxu0 %v667_v2 }
 0x248   :  { %1273 = vmatprep.subr.mxu0 %v800_v22 }
 0x2fc   :  { %v430_v47 = vpop.f32.mrf.mxu0 }
 0x2fd   :  { %v434_v48 = vadd.f32 1e-06, %v430_v47 }
 0x2fe   :  { %v1231_v49 = vpop.f32.mrf.mxu0 }
 0x2ff   :  { %437 = vperm.xlu0 %1307, %v434_v48   ;;  %v968_v48 = vld [vmem:[%s1561_s9 + $0x28] sm:$0xff]  ;;  %v967_v49 = vld [vmem:[%s1561_s9 + $0x20] sm:$0xff] }
 0x300   :  { %v1236_v50 = vpop.f32.mrf.mxu0 }
 0x302   :  { %v567_v51 = vpop.f32.mrf.mxu0 }
 0x304   :  { %v1239_v52 = vpop.f32.mrf.mxu0 }
 0x305   :  { %1241 = vmatpush3.msra.mxu1 %v1239_v52  ;;  %v964_v52 = vld [vmem:[%s1561_s9 + $0x8] sm:$0xff] }
 0x306   :  { %v577_v53 = vpop.f32.mrf.mxu0  ;;  %1242 = vmatprep.subr.mxu1 %v1330_v28 }
 0x307   :  { %1243 = vmatpush3.msra.mxu1 %v577_v53  ;;  %v963_v53 = vld [vmem:[%s1561_s9] sm:$0xff] }
 0x308   :  { %1244 = vmatprep.subr.mxu1 %v1330_v28 }
 0x309   :  { %1245 = vmatpush3.msra.mxu1 %v1236_v50  ;;  %v966_v50 = vld [vmem:[%s1561_s9 + $0x18] sm:$0xff] }
 0x30a   :  { %1246 = vmatprep.subr.mxu1 %v1330_v28  ;;  %v797_v28 = vld [vmem:[%s1559_s7] sm:$0xff] }
 0x30b   :  { %1247 = vmatpush3.msra.mxu1 %v567_v51  ;;  %v965_v51 = vld [vmem:[%s1561_s9 + $0x10] sm:$0xff] }
 0x30c   :  { %1249 = vmatmul.mubr.msk.f32.vlgmr.msra.gmra.mxu1 %vm49_vm0, %v446_v56  ;;  %1262 = vmatprep.subr.mxu1 %v804_v23 }
 0x30d   :  { %1263 = vmatpush3.msra.mxu1 %v804_v23 }
 0x30e   :  { %1264 = vmatprep.subr.mxu1 %v803_v25 }
 0x30f   :  { %1265 = vmatpush3.msra.mxu1 %v803_v25 }
 0x310   :  { %1266 = vmatprep.subr.mxu1 %v802_v27 }
 0x311   :  { %1267 = vmatpush3.msra.mxu1 %v802_v27 }
 0x312   :  { %1268 = vmatprep.subr.mxu1 %v801_v29 }
 0x313   :  { %1269 = vmatpush3.msra.mxu1 %v801_v29 }
 0x314   :  { %1284 = vmatprep.subr.mxu1 %v970_v30 }
 0x37a   :  { %v438_v57 = vpop.permute.xlu0 %437 }
 0x37b   :  { %1317 = vrcp.f32 %v438_v57 }
 0x388   :  { %v1318_v58 = vpop.eup %1317 }
 0x389   :  { %v441_v59 = vmul.f32 %v1318_v58, %v430_v47  ;;  %v969_v47 = vld [vmem:[%s1561_s9 + $0x30] sm:$0xff] }
 0x38b   :  { %1259 = vmatprep.mubr.msk.f32.mxu0 %vm49_vm0, %v441_v59 }
 0x3cc   :  { %v655_v60 = vpop.f32.mrf.mxu1 }
 0x3cd   :  { %v659_v61 = vadd.f32 1e-06, %v655_v60 }
 0x3ce   :  { %v1250_v62 = vpop.f32.mrf.mxu1 }
 0x3cf   :  { %662 = vperm.xlu1 %1308, %v659_v61  }
 0x44a   :  { %v663_v3 = vpop.permute.xlu1 %662 }
 0x44b   :  { %1319 = vrcp.f32 %v663_v3 }
 0x458   :  { %v1320_v4 = vpop.eup %1319 }
 0x459   :  { %v666_v5 = vmul.f32 %v1320_v4, %v655_v60 }
 0x45b   :  { %1260 = vmatmul.mubr.msk.f32.vlgmr.msra.gmra.mxu0 %vm49_vm0, %v666_v5 }
 0x45c   :  { %1281 = vmatprep.mubr.msk.f32.mxu0 %vm49_vm0, %v1433_v10  ;;  %1274 = vmatpush3.msra.mxu0 %v800_v22 }
 0x45d   :  { %1275 = vmatprep.subr.mxu0 %v799_v24 }
 0x45e   :  { %1276 = vmatpush3.msra.mxu0 %v799_v24  ;;  %v1130_v24 = vld [vmem:[%s1565_s11] ss:$0 sm:$0xff] }
 0x45f   :  { %1277 = vmatprep.subr.mxu0 %v798_v26 }
 0x460   :  { %1278 = vmatpush3.msra.mxu0 %v798_v26 }
 0x461   :  { %1279 = vmatprep.subr.mxu0 %v797_v28 }
 0x462   :  { %1280 = vmatpush3.msra.mxu0 %v797_v28 }
 0x463   :  { %1282 = vmatmul.mubr.msk.f32.vlgmr.msra.gmra.mxu0 %vm49_vm0, %v1440_v11 }
 0x51b   :  { %v1261_v6 = vpop.f32.mrf.mxu0 }
 0x51c   :  { %v757_v7 = vsel %vm49_vm0, %v1261_v6, 0.0 }
 0x51d   :  { %758 = vadd.xlane.f32.xlu1 %v757_v7  ;;  %v743_v8 = vpop.f32.mrf.mxu0 }
 0x51e   :  { %v754_v9 = vsel %vm49_vm0, %v743_v8, 0.0 }
 0x51f   :  { %755 = vadd.xlane.f32.xlu0 %v754_v9 }
 0x523   :  { %v1283_v54 = vpop.f32.mrf.mxu0 }
 0x525   :  { %v952_v57 = vpop.f32.mrf.mxu0 }
 0x5a6   :  { %v759_v12 = vpop.xlane.xlu1 %758 }
 0x5a7   :  { %v762_v13 = vmul.f32 0.03125, %v759_v12 }
 0x5a8   :  { %v756_v14 = vpop.xlane.xlu0 %755 }
 0x5a9   :  { %v761_v15 = vmul.f32 0.03125, %v756_v14  ;;  %v764_v16 = vsub.f32 %v1261_v6, %v762_v13 }
 0x5ab   :  { %v763_v17 = vsub.f32 %v743_v8, %v761_v15  ;;  %v766_v20 = vmul.f32 %v764_v16, %v764_v16 }
 0x5ad   :  { %v765_v18 = vmul.f32 %v763_v17, %v763_v17  ;;  %v770_v21 = vsel %vm49_vm0, %v766_v20, 0.0 }
 0x5af   :  { %v767_v19 = vsel %vm49_vm0, %v765_v18, 0.0 }
 0x5b0   :  { %768 = vadd.xlane.f32.xlu0 %v767_v19 }
 0x5b4   :  { %771 = vadd.xlane.f32.xlu0 %v770_v21  ;;  %v1129_v21 = vld [vmem:[%s1564_s10] ss:$0 sm:$0xff] }
 0x639   :  { %v769_v31 = vpop.xlane.xlu0 %768 }
 0x63a   :  { %v773_v32 = vmul.f32 0.03125, %v769_v31 }
 0x63c   :  { %v775_v33 = vadd.f32 1e-05, %v773_v32 }
 0x63d   :  { %v772_v34 = vpop.xlane.xlu0 %771 }
 0x63e   :  { %1321 = vrsqrt.f32 %v775_v33  ;;  %v774_v35 = vmul.f32 0.03125, %v772_v34 }
 0x640   :  { %v776_v36 = vadd.f32 1e-05, %v774_v35 }
 0x642   :  { %1323 = vrsqrt.f32 %v776_v36 }
 0x64b   :  { %v1322_v37 = vpop.eup %1321 }
 0x64c   :  { %v779_v39 = vmul.f32 %v1322_v37, %v763_v17 }
 0x64e   :  { %v787_v41 = vmul.f32 %v1121_v38, %v779_v39 }
 0x64f   :  { %v1324_v42 = vpop.eup %1323 }
 0x650   :  { %v780_v43 = vmul.f32 %v1324_v42, %v764_v16  ;;  %v795_v44 = vadd.f32 %v1122_v40, %v787_v41 }
 0x652   :  { %v788_v45 = vmul.f32 %v1121_v38, %v780_v43  ;;  %1270 = vmatprep.mubr.msk.f32.mxu1 %vm49_vm0, %v795_v44 }
 0x654   :  { %v796_v46 = vadd.f32 %v1122_v40, %v788_v45 }
 0x656   :  { %1271 = vmatmul.mubr.msk.f32.vlgmr.msra.gmra.mxu1 %vm49_vm0, %v796_v46 }
 0x657   :  { %1285 = vmatpush3.msra.mxu1 %v970_v30 }
 0x658   :  { %1286 = vmatprep.subr.mxu1 %v969_v47 }
 0x659   :  { %1287 = vmatpush3.msra.mxu1 %v969_v47 }
 0x65a   :  { %1288 = vmatprep.subr.mxu1 %v968_v48 }
 0x65b   :  { %1289 = vmatpush3.msra.mxu1 %v968_v48 }
 0x65c   :  { %1290 = vmatprep.subr.mxu1 %v967_v49 }
 0x65d   :  { %1291 = vmatpush3.msra.mxu1 %v967_v49 }
 0x65e   :  { %1292 = vmatprep.subr.mxu1 %v966_v50 }
 0x65f   :  { %1293 = vmatpush3.msra.mxu1 %v966_v50 }
 0x660   :  { %1294 = vmatprep.subr.mxu1 %v965_v51 }
 0x661   :  { %1295 = vmatpush3.msra.mxu1 %v965_v51 }
 0x662   :  { %1296 = vmatprep.subr.mxu1 %v964_v52 }
 0x663   :  { %1297 = vmatpush3.msra.mxu1 %v964_v52 }
 0x664   :  { %1298 = vmatprep.subr.mxu1 %v963_v53 }
 0x665   :  { %1299 = vmatpush3.msra.mxu1 %v963_v53 }
 0x716   :  { %v1272_v55 = vpop.f32.mrf.mxu1 }
 0x717   :  { %v958_v56 = vadd.f32 %v1283_v54, %v1272_v55 }
 0x718   :  { %v877_v58 = vpop.f32.mrf.mxu1 }
 0x719   :  { %v953_v59 = vadd.f32 %v952_v57, %v877_v58  ;;  %v962_v61 = vmax.f32 %v958_v56, 0.0 }
 0x71b   :  { %v961_v60 = vmax.f32 %v953_v59, 0.0 }
 0x71d   :  { %1300 = vmatprep.mubr.msk.f32.mxu1 %vm971_vm7, %v961_v60 }
 0x71e   :  { %1301 = vmatmul.mubr.msk.f32.vlgmr.msra.gmra.mxu1 %vm971_vm7, %v962_v61 }
 0x7de   :  { %v1302_v62 = vpop.f32.mrf.mxu1 }
 0x7df   :  { %v1058_v63 = vsel %vm49_vm0, %v1302_v62, 0.0 }
 0x7e0   :  { %1059 = vadd.xlane.f32.xlu0 %v1058_v63  ;;  %v1044_v0 = vpop.f32.mrf.mxu1 }
 0x7e1   :  { %v1055_v1 = vsel %vm49_vm0, %v1044_v0, 0.0 }
 0x7e2   :  { %1056 = vadd.xlane.f32.xlu1 %v1055_v1 }
 0x869   :  { %v1060_v2 = vpop.xlane.xlu0 %1059 }
 0x86a   :  { %v1062_v3 = vmul.f32 0.03125, %v1060_v2 }
 0x86b   :  { %v1057_v4 = vpop.xlane.xlu1 %1056 }
 0x86c   :  { %v1064_v5 = vsub.f32 %v1302_v62, %v1062_v3  ;;  %v1061_v6 = vmul.f32 0.03125, %v1057_v4 }
 0x86e   :  { %v1063_v7 = vsub.f32 %v1044_v0, %v1061_v6  ;;  %v1066_v8 = vmul.f32 %v1064_v5, %v1064_v5 }
 0x870   :  { %v1070_v9 = vsel %vm49_vm0, %v1066_v8, 0.0  ;;  %v1065_v12 = vmul.f32 %v1063_v7, %v1063_v7 }
 0x871   :  { %1071 = vadd.xlane.f32.xlu0 %v1070_v9 }
 0x872   :  { %v1067_v13 = vsel %vm49_vm0, %v1065_v12, 0.0 }
 0x873   :  { %1068 = vadd.xlane.f32.xlu1 %v1067_v13 }
 0x8fa   :  { %v1072_v14 = vpop.xlane.xlu0 %1071 }
 0x8fb   :  { %v1074_v15 = vmul.f32 0.03125, %v1072_v14 }
 0x8fc   :  { %v1069_v16 = vpop.xlane.xlu1 %1068 }
 0x8fd   :  { %v1076_v17 = vadd.f32 1e-05, %v1074_v15  ;;  %v1073_v18 = vmul.f32 0.03125, %v1069_v16 }
 0x8ff   :  { %1325 = vrsqrt.f32 %v1076_v17  ;;  %v1075_v19 = vadd.f32 1e-05, %v1073_v18 }
 0x901   :  { %1327 = vrsqrt.f32 %v1075_v19 }
 0x90c   :  { %v1326_v20 = vpop.eup %1325 }
 0x90d   :  { %v1080_v22 = vmul.f32 %v1326_v20, %v1064_v5 }
 0x90e   :  { %v1328_v23 = vpop.eup %1327 }
 0x90f   :  { %v1088_v25 = vmul.f32 %v1129_v21, %v1080_v22  ;;  %v1079_v26 = vmul.f32 %v1328_v23, %v1063_v7 }
 0x911   :  { %v1096_v27 = vadd.f32 %v1130_v24, %v1088_v25  ;;  %v1087_v28 = vmul.f32 %v1129_v21, %v1079_v26 }
 0x913   :  { %v1098_v29 = vadd.f32 %v1096_v27, %v1440_v11  ;;  %v1095_v30 = vadd.f32 %v1130_v24, %v1087_v28 }
 0x915   :  { %1100 = vst.msk [vmem:[%s1566_s12 + $0x8] sm:$0xff] %vm49_vm0, %v1098_v29  ;;  %v1097_v31 = vadd.f32 %v1095_v30, %v1433_v10 }
 0x917   :  { %1099 = vst.msk [vmem:[%s1566_s12] sm:$0xff] %vm49_vm0, %v1097_v31 }

</bundles_post_ra>
